<compile_context>
chip_gen: v6e
topology: v6e:2x2x1
jax: 0.10.0
libtpu: 0.0.40
codegen_flags: <defaults>
</compile_context>

<pallas_src>
import functools
import math

import jax
import jax.numpy as jnp
from jax import lax
from jax.experimental import pallas as pl
from jax.experimental.pallas import tpu as pltpu

# Small shapes consistent with the module (scaled-down hidden sizes).
LOOKBACK = 32          # lookback_window == seq_len
PATCH = 4              # patch_length
HIDDEN = 32            # LSTM hidden_dim (module default 256, scaled down)
LLM_HIDDEN = 64        # llm.config.hidden_size stand-in
BATCH = 8              # >=8 fills f32 sublanes; 64-256 fills MXU rows
NUM_PATCHES = LOOKBACK // PATCH   # 8


def _wg_offsets(H, P):
    """Row offsets inside the packed gate-weight slab (all 8-row aligned)."""
    pad = ((P + 7) // 8) * 8
    r_whh0 = 0
    r_wih1 = H
    r_whh1 = 2 * H
    r_wih0 = 3 * H
    r_b0 = 3 * H + pad
    r_b1 = r_b0 + 8
    total = r_b1 + 8
    return r_whh0, r_wih1, r_whh1, r_wih0, r_b0, r_b1, total


def _wp_offsets(H, D):
    """Row offsets inside the packed projection slab (all 8-row aligned)."""
    r_wfuse = 0
    r_wo = H
    r_b = H + D
    total = r_b + 8
    return r_wfuse, r_wo, r_b, total


def stocktime_kernel(patches_ref, text_ref, wg_ref, wp_ref, out_ref, h1_scr,
                     *, B, T):
    TB, P = patches_ref.shape
    D = text_ref.shape[1]
    H = wg_ref.shape[1] // 4
    S = T * P

    r_whh0, r_wih1, r_whh1, r_wih0, r_b0, r_b1, _ = _wg_offsets(H, P)
    r_wfuse, r_wo, r_bf, _ = _wp_offsets(H, D)

    # ---- weight slab slices (single packed DMA; static aligned sub-loads) --
    whh0 = wg_ref[r_whh0:r_whh0 + H, :]      # [H, 4H]
    wih1 = wg_ref[r_wih1:r_wih1 + H, :]      # [H, 4H]
    whh1 = wg_ref[r_whh1:r_whh1 + H, :]      # [H, 4H]
    wih0 = wg_ref[r_wih0:r_wih0 + P, :]      # [P, 4H]
    b0 = wg_ref[r_b0:r_b0 + 1, :]            # [1, 4H]
    b1 = wg_ref[r_b1:r_b1 + 1, :]            # [1, 4H]

    # ---- InstanceNorm1d(1), affine=False, eps=1e-5, biased variance ----
    # Stats derived from the t-major patch slab itself (price input dropped,
    # no in-kernel reshape): accumulate the T aligned [B, P] row blocks
    # (row r = t*B + b), then reduce over lanes.  All off the critical path.
    x = patches_ref[...]                                       # [T*B, P]
    acc = x[0:B, :]
    for t in range(1, T):
        acc = acc + x[t * B:(t + 1) * B, :]
    mean = jnp.sum(acc, axis=-1, keepdims=True) * (1.0 / S)    # [B, 1]
    mean_tm = jnp.concatenate([mean] * T, axis=0)              # [T*B, 1]
    xc = x - mean_tm
    xsq = xc * xc
    acc2 = xsq[0:B, :]
    for t in range(1, T):
        acc2 = acc2 + xsq[t * B:(t + 1) * B, :]
    var = jnp.sum(acc2, axis=-1, keepdims=True) * (1.0 / S)    # [B, 1]
    inv_tm = jnp.concatenate([lax.rsqrt(var + 1e-5)] * T, axis=0)
    xp = xc * inv_tm                                           # [T*B, P]

    # ---- layer-0 input matmul hoisted out of the recurrence; b0 folded in --
    gates_in0 = (jnp.dot(xp, wih0, preferred_element_type=jnp.float32)
                 + b0)                                         # [T*B, 4H]

    b1_b = jnp.broadcast_to(b1, (B, 4 * H))                    # hoisted bcast

    h0 = jnp.zeros((B, H), jnp.float32)
    c0 = jnp.zeros((B, H), jnp.float32)
    h1 = jnp.zeros((B, H), jnp.float32)
    c1 = jnp.zeros((B, H), jnp.float32)

    def gate_update(gates, c):
        # Whole-vreg sigmoid/tanh (2 EUP pushes per cell; EUP is its own
        # bundle slot), then slice i/f/g/o (torch gate order).
        sg = jax.nn.sigmoid(gates)
        th = jnp.tanh(gates)
        i = sg[:, 0:H]
        f = sg[:, H:2 * H]
        o = sg[:, 3 * H:4 * H]
        g = th[:, 2 * H:3 * H]
        c_new = f * c + i * g
        return o * jnp.tanh(c_new), c_new

    # T is small & static -> fully unrolled single basic block; the LLO
    # scheduler overlaps layer-0(t) with layer-1(t-1).  Inter-layer dropout
    # (p=0.2) is inference-mode identity.
    for t in range(T):
        # layer 0: only the recurrent matmul is on the serial path.
        g0 = gates_in0[t * B:(t + 1) * B, :] + jnp.dot(
            h0, whh0, preferred_element_type=jnp.float32)
        h0, c0 = gate_update(g0, c0)
        # layer 1: two independent dots (no lane concat on the serial chain).
        g1 = (jnp.dot(h0, wih1, preferred_element_type=jnp.float32)
              + jnp.dot(h1, whh1, preferred_element_type=jnp.float32)
              + b1_b)
        h1, c1 = gate_update(g1, c1)
        h1_scr[t * B:(t + 1) * B, :] = h1      # aligned block store, off-chain

    # ---- projections fused & batched, once, after the recurrence:
    #   pred = h1 @ (Wp @ Wo) + text @ Wo + (bp @ Wo + bo)
    h1_all = h1_scr[...]                                       # [T*B, H]
    preds = (jnp.dot(h1_all, wp_ref[r_wfuse:r_wfuse + H, :],
                     preferred_element_type=jnp.float32)
             + jnp.dot(text_ref[...], wp_ref[r_wo:r_wo + D, :],
                       preferred_element_type=jnp.float32)
             + wp_ref[r_bf:r_bf + 1, :])                       # [T*B, P]

    out_ref[...] = preds                                       # single store


def stocktime_forward(price, textual_embeddings, kparams):
    """price: [B, S] f32; textual_embeddings: [B, T, D_llm] f32 -> [B, T, P]."""
    B, S = price.shape
    T = S // PATCH
    D = textual_embeddings.shape[-1]
    price = price.astype(jnp.float32)

    # Wrapper-side layout plumbing only: t-major [T*B, .] slabs (row = t*B + b).
    patches_tm = jnp.transpose(price.reshape(B, T, PATCH),
                               (1, 0, 2)).reshape(T * B, PATCH)
    text_tm = jnp.transpose(textual_embeddings.astype(jnp.float32),
                            (1, 0, 2)).reshape(T * B, D)

    vmem = pl.BlockSpec(memory_space=pltpu.MemorySpace.VMEM)
    kernel = functools.partial(stocktime_kernel, B=B, T=T)
    out_tm = pl.pallas_call(
        kernel,
        out_shape=jax.ShapeDtypeStruct((T * B, PATCH), jnp.float32),
        in_specs=[vmem] * 4,           # 4 input DMAs (was 11)
        out_specs=vmem,
        scratch_shapes=[pltpu.VMEM((T * B, HIDDEN), jnp.float32)],
    )(patches_tm, text_tm, kparams["wg_slab"], kparams["wp_slab"])

    return jnp.transpose(out_tm.reshape(T, B, PATCH), (1, 0, 2))


def init_params(key):
    """Deterministic PyTorch-style uniform(-1/sqrt(fan), 1/sqrt(fan)) init.

    Returns (raw, kern): raw = torch-faithful transposed weights for the pure
    JAX reference; kern = two kernel-ready packed f32 slabs (gate weights +
    fused projection weights).
    """
    ks = jax.random.split(key, 12)

    def u(k, shape, bound):
        return jax.random.uniform(k, shape, jnp.float32, -bound, bound)

    kb = 1.0 / math.sqrt(HIDDEN)
    wih0 = u(ks[0], (4 * HIDDEN, PATCH), kb)
    whh0 = u(ks[1], (4 * HIDDEN, HIDDEN), kb)
    bih0 = u(ks[2], (4 * HIDDEN,), kb)
    bhh0 = u(ks[3], (4 * HIDDEN,), kb)
    wih1 = u(ks[4], (4 * HIDDEN, HIDDEN), kb)
    whh1 = u(ks[5], (4 * HIDDEN, HIDDEN), kb)
    bih1 = u(ks[6], (4 * HIDDEN,), kb)
    bhh1 = u(ks[7], (4 * HIDDEN,), kb)
    wp = u(ks[8], (LLM_HIDDEN, HIDDEN), kb)
    bp = u(ks[9], (LLM_HIDDEN,), kb)
    ko = 1.0 / math.sqrt(LLM_HIDDEN)
    wo = u(ks[10], (PATCH, LLM_HIDDEN), ko)
    bo = u(ks[11], (PATCH,), ko)

    raw = dict(
        wih0_t=wih0.T, whh0_t=whh0.T, b0=(bih0 + bhh0)[None, :],
        wih1_t=wih1.T, whh1_t=whh1.T, b1=(bih1 + bhh1)[None, :],
        wp_t=wp.T, bp=bp[None, :], wo_t=wo.T, bo=bo[None, :],
    )

    H, P, D = HIDDEN, PATCH, LLM_HIDDEN

    # Gate-weight slab: [Whh0; Wih1; Whh1; Wih0; b0; b1] padded to 8-row blocks.
    r_whh0, r_wih1, r_whh1, r_wih0, r_b0, r_b1, wg_rows = _wg_offsets(H, P)
    wg = jnp.zeros((wg_rows, 4 * H), jnp.float32)
    wg = wg.at[r_whh0:r_whh0 + H].set(raw["whh0_t"])
    wg = wg.at[r_wih1:r_wih1 + H].set(raw["wih1_t"])
    wg = wg.at[r_whh1:r_whh1 + H].set(raw["whh1_t"])
    wg = wg.at[r_wih0:r_wih0 + P].set(raw["wih0_t"])
    wg = wg.at[r_b0:r_b0 + 1].set(raw["b0"])
    wg = wg.at[r_b1:r_b1 + 1].set(raw["b1"])

    # Fused projections: Linear(H->D) followed by Linear(D->P) collapses to a
    # single [H, P] matrix plus a combined bias (fp-reassociation only).
    w_fused = jnp.dot(raw["wp_t"], raw["wo_t"], precision="highest")
    b_fused = jnp.dot(raw["bp"], raw["wo_t"], precision="highest") + raw["bo"]
    r_wfuse, r_wo, r_bf, wp_rows = _wp_offsets(H, D)
    wpk = jnp.zeros((wp_rows, P), jnp.float32)
    wpk = wpk.at[r_wfuse:r_wfuse + H].set(w_fused)
    wpk = wpk.at[r_wo:r_wo + D].set(raw["wo_t"])
    wpk = wpk.at[r_bf:r_bf + 1].set(b_fused)

    kern = dict(wg_slab=wg, wp_slab=wpk)
    return raw, kern


def reference_forward(price, textual_embeddings, params):
    """Pure-JAX, torch-faithful (unfused) reference for correctness checks."""
    B, S = price.shape
    T = S // PATCH
    mean = jnp.mean(price, axis=-1, keepdims=True)
    var = jnp.mean((price - mean) ** 2, axis=-1, keepdims=True)
    xn = (price - mean) / jnp.sqrt(var + 1e-5)
    patches = xn.reshape(B, T, PATCH)

    H = HIDDEN
    h0 = jnp.zeros((B, H)); c0 = jnp.zeros((B, H))
    h1 = jnp.zeros((B, H)); c1 = jnp.zeros((B, H))

    def cell(x_t, h, c, w_ih_t, w_hh_t, b):
        gates = x_t @ w_ih_t + h @ w_hh_t + b
        i = jax.nn.sigmoid(gates[:, 0:H])
        f = jax.nn.sigmoid(gates[:, H:2 * H])
        g = jnp.tanh(gates[:, 2 * H:3 * H])
        o = jax.nn.sigmoid(gates[:, 3 * H:4 * H])
        c = f * c + i * g
        return o * jnp.tanh(c), c

    outs = []
    for t in range(T):
        h0, c0 = cell(patches[:, t, :], h0, c0,
                      params["wih0_t"], params["whh0_t"], params["b0"])
        h1, c1 = cell(h0, h1, c1,
                      params["wih1_t"], params["whh1_t"], params["b1"])
        pe = h1 @ params["wp_t"] + params["bp"]
        fused = pe + textual_embeddings[:, t, :]
        outs.append(fused @ params["wo_t"] + params["bo"])
    return jnp.stack(outs, axis=1)


if __name__ == "__main__":
    key = jax.random.PRNGKey(0)
    k_price, k_text, k_params = jax.random.split(key, 3)

    # Synthetic price sequences (look like prices around $100).
    price = 100.0 + 5.0 * jax.random.normal(k_price, (BATCH, LOOKBACK), jnp.float32)

    # TODO(synk): the frozen LLM + tokenizer textual path has no Pallas
    # equivalent; deterministic stand-in embeddings (mirrors the module's
    # torch.randn fallback when LLM processing fails).
    textual_embeddings = jax.random.normal(
        k_text, (BATCH, NUM_PATCHES, LLM_HIDDEN), jnp.float32)

    raw_params, kern_params = init_params(k_params)

    out = stocktime_forward(price, textual_embeddings, kern_params)
    out = jax.block_until_ready(out)
    assert out.shape == (BATCH, NUM_PATCHES, PATCH)

    ref = jax.block_until_ready(
        reference_forward(price, textual_embeddings, raw_params))
    # Above f32-exact because the fused projection reassociates sums and MXU
    # f32 pass-precision may differ from the XLA reference matmuls.
    assert jnp.allclose(out, ref, atol=5e-3, rtol=5e-3), "kernel/reference mismatch"

    print("KERNEL_OK")
</pallas_src>

<mosaic_0001>
module attributes {stable_mosaic.version = 11 : i64} {
  func.func @stocktime_kernel(%arg0: memref<64x4xf32, #tpu.memory_space<vmem>>, %arg1: memref<64x64xf32, #tpu.memory_space<vmem>>, %arg2: memref<120x128xf32, #tpu.memory_space<vmem>>, %arg3: memref<104x4xf32, #tpu.memory_space<vmem>>, %arg4: memref<64x4xf32, #tpu.memory_space<vmem>>, %arg5: memref<64x32xf32, #tpu.memory_space<vmem>>) attributes {dimension_semantics = [], scalar_prefetch = 0 : i64, scratch_operands = 1 : i64, tpu.core_type = #tpu.core_type<tc>} {
    %c0 = arith.constant 0 : index
    %c0_0 = arith.constant 0 : index
    %0 = vector.load %arg2[%c0, %c0_0] : memref<120x128xf32, #tpu.memory_space<vmem>>, vector<32x128xf32>
    %c32 = arith.constant 32 : index
    %c0_1 = arith.constant 0 : index
    %1 = vector.load %arg2[%c32, %c0_1] : memref<120x128xf32, #tpu.memory_space<vmem>>, vector<32x128xf32>
    %c64 = arith.constant 64 : index
    %c0_2 = arith.constant 0 : index
    %2 = vector.load %arg2[%c64, %c0_2] : memref<120x128xf32, #tpu.memory_space<vmem>>, vector<32x128xf32>
    %c96 = arith.constant 96 : index
    %c0_3 = arith.constant 0 : index
    %3 = vector.load %arg2[%c96, %c0_3] : memref<120x128xf32, #tpu.memory_space<vmem>>, vector<4x128xf32>
    %c104 = arith.constant 104 : index
    %c0_4 = arith.constant 0 : index
    %4 = vector.load %arg2[%c104, %c0_4] : memref<120x128xf32, #tpu.memory_space<vmem>>, vector<1x128xf32>
    %c112 = arith.constant 112 : index
    %c0_5 = arith.constant 0 : index
    %5 = vector.load %arg2[%c112, %c0_5] : memref<120x128xf32, #tpu.memory_space<vmem>>, vector<1x128xf32>
    %c0_6 = arith.constant 0 : index
    %c0_7 = arith.constant 0 : index
    %6 = vector.load %arg0[%c0_6, %c0_7] : memref<64x4xf32, #tpu.memory_space<vmem>>, vector<64x4xf32>
    %7 = vector.extract_strided_slice %6 {offsets = [0, 0], sizes = [8, 4], strides = [1, 1]} : vector<64x4xf32> to vector<8x4xf32>
    %8 = vector.extract_strided_slice %6 {offsets = [8, 0], sizes = [8, 4], strides = [1, 1]} : vector<64x4xf32> to vector<8x4xf32>
    %9 = arith.addf %7, %8 : vector<8x4xf32>
    %10 = vector.extract_strided_slice %6 {offsets = [16, 0], sizes = [8, 4], strides = [1, 1]} : vector<64x4xf32> to vector<8x4xf32>
    %11 = arith.addf %9, %10 : vector<8x4xf32>
    %12 = vector.extract_strided_slice %6 {offsets = [24, 0], sizes = [8, 4], strides = [1, 1]} : vector<64x4xf32> to vector<8x4xf32>
    %13 = arith.addf %11, %12 : vector<8x4xf32>
    %14 = vector.extract_strided_slice %6 {offsets = [32, 0], sizes = [8, 4], strides = [1, 1]} : vector<64x4xf32> to vector<8x4xf32>
    %15 = arith.addf %13, %14 : vector<8x4xf32>
    %16 = vector.extract_strided_slice %6 {offsets = [40, 0], sizes = [8, 4], strides = [1, 1]} : vector<64x4xf32> to vector<8x4xf32>
    %17 = arith.addf %15, %16 : vector<8x4xf32>
    %18 = vector.extract_strided_slice %6 {offsets = [48, 0], sizes = [8, 4], strides = [1, 1]} : vector<64x4xf32> to vector<8x4xf32>
    %19 = arith.addf %17, %18 : vector<8x4xf32>
    %20 = vector.extract_strided_slice %6 {offsets = [56, 0], sizes = [8, 4], strides = [1, 1]} : vector<64x4xf32> to vector<8x4xf32>
    %21 = arith.addf %19, %20 : vector<8x4xf32>
    %cst = arith.constant dense<0.000000e+00> : vector<8xf32>
    %22 = vector.multi_reduction <add>, %21, %cst [1] : vector<8x4xf32> to vector<8xf32>
    %23 = vector.shape_cast %22 : vector<8xf32> to vector<8x1xf32>
    %cst_8 = arith.constant 3.125000e-02 : f32
    %24 = vector.broadcast %cst_8 : f32 to vector<8x1xf32>
    %25 = arith.mulf %23, %24 : vector<8x1xf32>
    %26 = tpu.concatenate %25, %25, %25, %25, %25, %25, %25, %25 in 0 : vector<8x1xf32>, vector<8x1xf32>, vector<8x1xf32>, vector<8x1xf32>, vector<8x1xf32>, vector<8x1xf32>, vector<8x1xf32>, vector<8x1xf32> -> vector<64x1xf32>
    %27 = vector.broadcast %26 : vector<64x1xf32> to vector<64x4xf32>
    %28 = arith.subf %6, %27 : vector<64x4xf32>
    %29 = arith.mulf %28, %28 : vector<64x4xf32>
    %30 = vector.extract_strided_slice %29 {offsets = [0, 0], sizes = [8, 4], strides = [1, 1]} : vector<64x4xf32> to vector<8x4xf32>
    %31 = vector.extract_strided_slice %29 {offsets = [8, 0], sizes = [8, 4], strides = [1, 1]} : vector<64x4xf32> to vector<8x4xf32>
    %32 = arith.addf %30, %31 : vector<8x4xf32>
    %33 = vector.extract_strided_slice %29 {offsets = [16, 0], sizes = [8, 4], strides = [1, 1]} : vector<64x4xf32> to vector<8x4xf32>
    %34 = arith.addf %32, %33 : vector<8x4xf32>
    %35 = vector.extract_strided_slice %29 {offsets = [24, 0], sizes = [8, 4], strides = [1, 1]} : vector<64x4xf32> to vector<8x4xf32>
    %36 = arith.addf %34, %35 : vector<8x4xf32>
    %37 = vector.extract_strided_slice %29 {offsets = [32, 0], sizes = [8, 4], strides = [1, 1]} : vector<64x4xf32> to vector<8x4xf32>
    %38 = arith.addf %36, %37 : vector<8x4xf32>
    %39 = vector.extract_strided_slice %29 {offsets = [40, 0], sizes = [8, 4], strides = [1, 1]} : vector<64x4xf32> to vector<8x4xf32>
    %40 = arith.addf %38, %39 : vector<8x4xf32>
    %41 = vector.extract_strided_slice %29 {offsets = [48, 0], sizes = [8, 4], strides = [1, 1]} : vector<64x4xf32> to vector<8x4xf32>
    %42 = arith.addf %40, %41 : vector<8x4xf32>
    %43 = vector.extract_strided_slice %29 {offsets = [56, 0], sizes = [8, 4], strides = [1, 1]} : vector<64x4xf32> to vector<8x4xf32>
    %44 = arith.addf %42, %43 : vector<8x4xf32>
    %cst_9 = arith.constant dense<0.000000e+00> : vector<8xf32>
    %45 = vector.multi_reduction <add>, %44, %cst_9 [1] : vector<8x4xf32> to vector<8xf32>
    %46 = vector.shape_cast %45 : vector<8xf32> to vector<8x1xf32>
    %cst_10 = arith.constant 3.125000e-02 : f32
    %47 = vector.broadcast %cst_10 : f32 to vector<8x1xf32>
    %48 = arith.mulf %46, %47 : vector<8x1xf32>
    %cst_11 = arith.constant 9.99999974E-6 : f32
    %49 = vector.broadcast %cst_11 : f32 to vector<8x1xf32>
    %50 = arith.addf %48, %49 : vector<8x1xf32>
    %51 = math.rsqrt %50 : vector<8x1xf32>
    %52 = tpu.concatenate %51, %51, %51, %51, %51, %51, %51, %51 in 0 : vector<8x1xf32>, vector<8x1xf32>, vector<8x1xf32>, vector<8x1xf32>, vector<8x1xf32>, vector<8x1xf32>, vector<8x1xf32>, vector<8x1xf32> -> vector<64x1xf32>
    %53 = vector.broadcast %52 : vector<64x1xf32> to vector<64x4xf32>
    %54 = arith.mulf %28, %53 : vector<64x4xf32>
    %cst_12 = arith.constant dense<0.000000e+00> : vector<64x128xf32>
    %55 = tpu.matmul %54, %3, %cst_12 {dimension_numbers = #tpu.dot_dimension_numbers<[1], [0], [0], [1], [0, 0, 1, 1], [], []>} : vector<64x4xf32>, vector<4x128xf32>, vector<64x128xf32> -> vector<64x128xf32>
    %56 = vector.broadcast %4 : vector<1x128xf32> to vector<64x128xf32>
    %57 = arith.addf %55, %56 : vector<64x128xf32>
    %58 = vector.shape_cast %5 : vector<1x128xf32> to vector<1x128xf32>
    %59 = vector.broadcast %58 : vector<1x128xf32> to vector<8x128xf32>
    %cst_13 = arith.constant 0.000000e+00 : f32
    %60 = vector.broadcast %cst_13 : f32 to vector<8x32xf32>
    %cst_14 = arith.constant 0.000000e+00 : f32
    %61 = vector.broadcast %cst_14 : f32 to vector<8x32xf32>
    %cst_15 = arith.constant 0.000000e+00 : f32
    %62 = vector.broadcast %cst_15 : f32 to vector<8x32xf32>
    %cst_16 = arith.constant 0.000000e+00 : f32
    %63 = vector.broadcast %cst_16 : f32 to vector<8x32xf32>
    %64 = vector.extract_strided_slice %57 {offsets = [0, 0], sizes = [8, 128], strides = [1, 1]} : vector<64x128xf32> to vector<8x128xf32>
    %cst_17 = arith.constant dense<0.000000e+00> : vector<8x128xf32>
    %65 = tpu.matmul %60, %0, %cst_17 {dimension_numbers = #tpu.dot_dimension_numbers<[1], [0], [0], [1], [0, 0, 1, 1], [], []>} : vector<8x32xf32>, vector<32x128xf32>, vector<8x128xf32> -> vector<8x128xf32>
    %66 = arith.addf %64, %65 : vector<8x128xf32>
    %67 = arith.negf %66 : vector<8x128xf32>
    %68 = math.exp %67 : vector<8x128xf32>
    %cst_18 = arith.constant 1.000000e+00 : f32
    %69 = vector.broadcast %cst_18 : f32 to vector<8x128xf32>
    %70 = arith.addf %69, %68 : vector<8x128xf32>
    %71 = arith.divf %69, %70 : vector<8x128xf32>
    %72 = math.tanh %66 : vector<8x128xf32>
    %73 = vector.extract_strided_slice %71 {offsets = [0, 0], sizes = [8, 32], strides = [1, 1]} : vector<8x128xf32> to vector<8x32xf32>
    %74 = vector.extract_strided_slice %71 {offsets = [0, 32], sizes = [8, 32], strides = [1, 1]} : vector<8x128xf32> to vector<8x32xf32>
    %75 = vector.extract_strided_slice %71 {offsets = [0, 96], sizes = [8, 32], strides = [1, 1]} : vector<8x128xf32> to vector<8x32xf32>
    %76 = vector.extract_strided_slice %72 {offsets = [0, 64], sizes = [8, 32], strides = [1, 1]} : vector<8x128xf32> to vector<8x32xf32>
    %77 = arith.mulf %74, %61 : vector<8x32xf32>
    %78 = arith.mulf %73, %76 : vector<8x32xf32>
    %79 = arith.addf %77, %78 : vector<8x32xf32>
    %80 = math.tanh %79 : vector<8x32xf32>
    %81 = arith.mulf %75, %80 : vector<8x32xf32>
    %cst_19 = arith.constant dense<0.000000e+00> : vector<8x128xf32>
    %82 = tpu.matmul %81, %1, %cst_19 {dimension_numbers = #tpu.dot_dimension_numbers<[1], [0], [0], [1], [0, 0, 1, 1], [], []>} : vector<8x32xf32>, vector<32x128xf32>, vector<8x128xf32> -> vector<8x128xf32>
    %cst_20 = arith.constant dense<0.000000e+00> : vector<8x128xf32>
    %83 = tpu.matmul %62, %2, %cst_20 {dimension_numbers = #tpu.dot_dimension_numbers<[1], [0], [0], [1], [0, 0, 1, 1], [], []>} : vector<8x32xf32>, vector<32x128xf32>, vector<8x128xf32> -> vector<8x128xf32>
    %84 = arith.addf %82, %83 : vector<8x128xf32>
    %85 = arith.addf %84, %59 : vector<8x128xf32>
    %86 = arith.negf %85 : vector<8x128xf32>
    %87 = math.exp %86 : vector<8x128xf32>
    %cst_21 = arith.constant 1.000000e+00 : f32
    %88 = vector.broadcast %cst_21 : f32 to vector<8x128xf32>
    %89 = arith.addf %88, %87 : vector<8x128xf32>
    %90 = arith.divf %88, %89 : vector<8x128xf32>
    %91 = math.tanh %85 : vector<8x128xf32>
    %92 = vector.extract_strided_slice %90 {offsets = [0, 0], sizes = [8, 32], strides = [1, 1]} : vector<8x128xf32> to vector<8x32xf32>
    %93 = vector.extract_strided_slice %90 {offsets = [0, 32], sizes = [8, 32], strides = [1, 1]} : vector<8x128xf32> to vector<8x32xf32>
    %94 = vector.extract_strided_slice %90 {offsets = [0, 96], sizes = [8, 32], strides = [1, 1]} : vector<8x128xf32> to vector<8x32xf32>
    %95 = vector.extract_strided_slice %91 {offsets = [0, 64], sizes = [8, 32], strides = [1, 1]} : vector<8x128xf32> to vector<8x32xf32>
    %96 = arith.mulf %93, %63 : vector<8x32xf32>
    %97 = arith.mulf %92, %95 : vector<8x32xf32>
    %98 = arith.addf %96, %97 : vector<8x32xf32>
    %99 = math.tanh %98 : vector<8x32xf32>
    %100 = arith.mulf %94, %99 : vector<8x32xf32>
    %c0_22 = arith.constant 0 : index
    %c0_23 = arith.constant 0 : index
    %101 = vector.load %arg5[%c0_22, %c0_23] : memref<64x32xf32, #tpu.memory_space<vmem>>, vector<8x32xf32>
    tpu.vector_store %arg5[%c0_22, %c0_23], %100 {strides = array<i32>} : memref<64x32xf32, #tpu.memory_space<vmem>>, vector<8x32xf32>,
    %102 = vector.extract_strided_slice %57 {offsets = [8, 0], sizes = [8, 128], strides = [1, 1]} : vector<64x128xf32> to vector<8x128xf32>
    %cst_24 = arith.constant dense<0.000000e+00> : vector<8x128xf32>
    %103 = tpu.matmul %81, %0, %cst_24 {dimension_numbers = #tpu.dot_dimension_numbers<[1], [0], [0], [1], [0, 0, 1, 1], [], []>} : vector<8x32xf32>, vector<32x128xf32>, vector<8x128xf32> -> vector<8x128xf32>
    %104 = arith.addf %102, %103 : vector<8x128xf32>
    %105 = arith.negf %104 : vector<8x128xf32>
    %106 = math.exp %105 : vector<8x128xf32>
    %cst_25 = arith.constant 1.000000e+00 : f32
    %107 = vector.broadcast %cst_25 : f32 to vector<8x128xf32>
    %108 = arith.addf %107, %106 : vector<8x128xf32>
    %109 = arith.divf %107, %108 : vector<8x128xf32>
    %110 = math.tanh %104 : vector<8x128xf32>
    %111 = vector.extract_strided_slice %109 {offsets = [0, 0], sizes = [8, 32], strides = [1, 1]} : vector<8x128xf32> to vector<8x32xf32>
    %112 = vector.extract_strided_slice %109 {offsets = [0, 32], sizes = [8, 32], strides = [1, 1]} : vector<8x128xf32> to vector<8x32xf32>
    %113 = vector.extract_strided_slice %109 {offsets = [0, 96], sizes = [8, 32], strides = [1, 1]} : vector<8x128xf32> to vector<8x32xf32>
    %114 = vector.extract_strided_slice %110 {offsets = [0, 64], sizes = [8, 32], strides = [1, 1]} : vector<8x128xf32> to vector<8x32xf32>
    %115 = arith.mulf %112, %79 : vector<8x32xf32>
    %116 = arith.mulf %111, %114 : vector<8x32xf32>
    %117 = arith.addf %115, %116 : vector<8x32xf32>
    %118 = math.tanh %117 : vector<8x32xf32>
    %119 = arith.mulf %113, %118 : vector<8x32xf32>
    %cst_26 = arith.constant dense<0.000000e+00> : vector<8x128xf32>
    %120 = tpu.matmul %119, %1, %cst_26 {dimension_numbers = #tpu.dot_dimension_numbers<[1], [0], [0], [1], [0, 0, 1, 1], [], []>} : vector<8x32xf32>, vector<32x128xf32>, vector<8x128xf32> -> vector<8x128xf32>
    %cst_27 = arith.constant dense<0.000000e+00> : vector<8x128xf32>
    %121 = tpu.matmul %100, %2, %cst_27 {dimension_numbers = #tpu.dot_dimension_numbers<[1], [0], [0], [1], [0, 0, 1, 1], [], []>} : vector<8x32xf32>, vector<32x128xf32>, vector<8x128xf32> -> vector<8x128xf32>
    %122 = arith.addf %120, %121 : vector<8x128xf32>
    %123 = arith.addf %122, %59 : vector<8x128xf32>
    %124 = arith.negf %123 : vector<8x128xf32>
    %125 = math.exp %124 : vector<8x128xf32>
    %cst_28 = arith.constant 1.000000e+00 : f32
    %126 = vector.broadcast %cst_28 : f32 to vector<8x128xf32>
    %127 = arith.addf %126, %125 : vector<8x128xf32>
    %128 = arith.divf %126, %127 : vector<8x128xf32>
    %129 = math.tanh %123 : vector<8x128xf32>
    %130 = vector.extract_strided_slice %128 {offsets = [0, 0], sizes = [8, 32], strides = [1, 1]} : vector<8x128xf32> to vector<8x32xf32>
    %131 = vector.extract_strided_slice %128 {offsets = [0, 32], sizes = [8, 32], strides = [1, 1]} : vector<8x128xf32> to vector<8x32xf32>
    %132 = vector.extract_strided_slice %128 {offsets = [0, 96], sizes = [8, 32], strides = [1, 1]} : vector<8x128xf32> to vector<8x32xf32>
    %133 = vector.extract_strided_slice %129 {offsets = [0, 64], sizes = [8, 32], strides = [1, 1]} : vector<8x128xf32> to vector<8x32xf32>
    %134 = arith.mulf %131, %98 : vector<8x32xf32>
    %135 = arith.mulf %130, %133 : vector<8x32xf32>
    %136 = arith.addf %134, %135 : vector<8x32xf32>
    %137 = math.tanh %136 : vector<8x32xf32>
    %138 = arith.mulf %132, %137 : vector<8x32xf32>
    %c8 = arith.constant 8 : index
    %c0_29 = arith.constant 0 : index
    %139 = vector.load %arg5[%c8, %c0_29] : memref<64x32xf32, #tpu.memory_space<vmem>>, vector<8x32xf32>
    tpu.vector_store %arg5[%c8, %c0_29], %138 {strides = array<i32>} : memref<64x32xf32, #tpu.memory_space<vmem>>, vector<8x32xf32>,
    %140 = vector.extract_strided_slice %57 {offsets = [16, 0], sizes = [8, 128], strides = [1, 1]} : vector<64x128xf32> to vector<8x128xf32>
    %cst_30 = arith.constant dense<0.000000e+00> : vector<8x128xf32>
    %141 = tpu.matmul %119, %0, %cst_30 {dimension_numbers = #tpu.dot_dimension_numbers<[1], [0], [0], [1], [0, 0, 1, 1], [], []>} : vector<8x32xf32>, vector<32x128xf32>, vector<8x128xf32> -> vector<8x128xf32>
    %142 = arith.addf %140, %141 : vector<8x128xf32>
    %143 = arith.negf %142 : vector<8x128xf32>
    %144 = math.exp %143 : vector<8x128xf32>
    %cst_31 = arith.constant 1.000000e+00 : f32
    %145 = vector.broadcast %cst_31 : f32 to vector<8x128xf32>
    %146 = arith.addf %145, %144 : vector<8x128xf32>
    %147 = arith.divf %145, %146 : vector<8x128xf32>
    %148 = math.tanh %142 : vector<8x128xf32>
    %149 = vector.extract_strided_slice %147 {offsets = [0, 0], sizes = [8, 32], strides = [1, 1]} : vector<8x128xf32> to vector<8x32xf32>
    %150 = vector.extract_strided_slice %147 {offsets = [0, 32], sizes = [8, 32], strides = [1, 1]} : vector<8x128xf32> to vector<8x32xf32>
    %151 = vector.extract_strided_slice %147 {offsets = [0, 96], sizes = [8, 32], strides = [1, 1]} : vector<8x128xf32> to vector<8x32xf32>
    %152 = vector.extract_strided_slice %148 {offsets = [0, 64], sizes = [8, 32], strides = [1, 1]} : vector<8x128xf32> to vector<8x32xf32>
    %153 = arith.mulf %150, %117 : vector<8x32xf32>
    %154 = arith.mulf %149, %152 : vector<8x32xf32>
    %155 = arith.addf %153, %154 : vector<8x32xf32>
    %156 = math.tanh %155 : vector<8x32xf32>
    %157 = arith.mulf %151, %156 : vector<8x32xf32>
    %cst_32 = arith.constant dense<0.000000e+00> : vector<8x128xf32>
    %158 = tpu.matmul %157, %1, %cst_32 {dimension_numbers = #tpu.dot_dimension_numbers<[1], [0], [0], [1], [0, 0, 1, 1], [], []>} : vector<8x32xf32>, vector<32x128xf32>, vector<8x128xf32> -> vector<8x128xf32>
    %cst_33 = arith.constant dense<0.000000e+00> : vector<8x128xf32>
    %159 = tpu.matmul %138, %2, %cst_33 {dimension_numbers = #tpu.dot_dimension_numbers<[1], [0], [0], [1], [0, 0, 1, 1], [], []>} : vector<8x32xf32>, vector<32x128xf32>, vector<8x128xf32> -> vector<8x128xf32>
    %160 = arith.addf %158, %159 : vector<8x128xf32>
    %161 = arith.addf %160, %59 : vector<8x128xf32>
    %162 = arith.negf %161 : vector<8x128xf32>
    %163 = math.exp %162 : vector<8x128xf32>
    %cst_34 = arith.constant 1.000000e+00 : f32
    %164 = vector.broadcast %cst_34 : f32 to vector<8x128xf32>
    %165 = arith.addf %164, %163 : vector<8x128xf32>
    %166 = arith.divf %164, %165 : vector<8x128xf32>
    %167 = math.tanh %161 : vector<8x128xf32>
    %168 = vector.extract_strided_slice %166 {offsets = [0, 0], sizes = [8, 32], strides = [1, 1]} : vector<8x128xf32> to vector<8x32xf32>
    %169 = vector.extract_strided_slice %166 {offsets = [0, 32], sizes = [8, 32], strides = [1, 1]} : vector<8x128xf32> to vector<8x32xf32>
    %170 = vector.extract_strided_slice %166 {offsets = [0, 96], sizes = [8, 32], strides = [1, 1]} : vector<8x128xf32> to vector<8x32xf32>
    %171 = vector.extract_strided_slice %167 {offsets = [0, 64], sizes = [8, 32], strides = [1, 1]} : vector<8x128xf32> to vector<8x32xf32>
    %172 = arith.mulf %169, %136 : vector<8x32xf32>
    %173 = arith.mulf %168, %171 : vector<8x32xf32>
    %174 = arith.addf %172, %173 : vector<8x32xf32>
    %175 = math.tanh %174 : vector<8x32xf32>
    %176 = arith.mulf %170, %175 : vector<8x32xf32>
    %c16 = arith.constant 16 : index
    %c0_35 = arith.constant 0 : index
    %177 = vector.load %arg5[%c16, %c0_35] : memref<64x32xf32, #tpu.memory_space<vmem>>, vector<8x32xf32>
    tpu.vector_store %arg5[%c16, %c0_35], %176 {strides = array<i32>} : memref<64x32xf32, #tpu.memory_space<vmem>>, vector<8x32xf32>,
    %178 = vector.extract_strided_slice %57 {offsets = [24, 0], sizes = [8, 128], strides = [1, 1]} : vector<64x128xf32> to vector<8x128xf32>
    %cst_36 = arith.constant dense<0.000000e+00> : vector<8x128xf32>
    %179 = tpu.matmul %157, %0, %cst_36 {dimension_numbers = #tpu.dot_dimension_numbers<[1], [0], [0], [1], [0, 0, 1, 1], [], []>} : vector<8x32xf32>, vector<32x128xf32>, vector<8x128xf32> -> vector<8x128xf32>
    %180 = arith.addf %178, %179 : vector<8x128xf32>
    %181 = arith.negf %180 : vector<8x128xf32>
    %182 = math.exp %181 : vector<8x128xf32>
    %cst_37 = arith.constant 1.000000e+00 : f32
    %183 = vector.broadcast %cst_37 : f32 to vector<8x128xf32>
    %184 = arith.addf %183, %182 : vector<8x128xf32>
    %185 = arith.divf %183, %184 : vector<8x128xf32>
    %186 = math.tanh %180 : vector<8x128xf32>
    %187 = vector.extract_strided_slice %185 {offsets = [0, 0], sizes = [8, 32], strides = [1, 1]} : vector<8x128xf32> to vector<8x32xf32>
    %188 = vector.extract_strided_slice %185 {offsets = [0, 32], sizes = [8, 32], strides = [1, 1]} : vector<8x128xf32> to vector<8x32xf32>
    %189 = vector.extract_strided_slice %185 {offsets = [0, 96], sizes = [8, 32], strides = [1, 1]} : vector<8x128xf32> to vector<8x32xf32>
    %190 = vector.extract_strided_slice %186 {offsets = [0, 64], sizes = [8, 32], strides = [1, 1]} : vector<8x128xf32> to vector<8x32xf32>
    %191 = arith.mulf %188, %155 : vector<8x32xf32>
    %192 = arith.mulf %187, %190 : vector<8x32xf32>
    %193 = arith.addf %191, %192 : vector<8x32xf32>
    %194 = math.tanh %193 : vector<8x32xf32>
    %195 = arith.mulf %189, %194 : vector<8x32xf32>
    %cst_38 = arith.constant dense<0.000000e+00> : vector<8x128xf32>
    %196 = tpu.matmul %195, %1, %cst_38 {dimension_numbers = #tpu.dot_dimension_numbers<[1], [0], [0], [1], [0, 0, 1, 1], [], []>} : vector<8x32xf32>, vector<32x128xf32>, vector<8x128xf32> -> vector<8x128xf32>
    %cst_39 = arith.constant dense<0.000000e+00> : vector<8x128xf32>
    %197 = tpu.matmul %176, %2, %cst_39 {dimension_numbers = #tpu.dot_dimension_numbers<[1], [0], [0], [1], [0, 0, 1, 1], [], []>} : vector<8x32xf32>, vector<32x128xf32>, vector<8x128xf32> -> vector<8x128xf32>
    %198 = arith.addf %196, %197 : vector<8x128xf32>
    %199 = arith.addf %198, %59 : vector<8x128xf32>
    %200 = arith.negf %199 : vector<8x128xf32>
    %201 = math.exp %200 : vector<8x128xf32>
    %cst_40 = arith.constant 1.000000e+00 : f32
    %202 = vector.broadcast %cst_40 : f32 to vector<8x128xf32>
    %203 = arith.addf %202, %201 : vector<8x128xf32>
    %204 = arith.divf %202, %203 : vector<8x128xf32>
    %205 = math.tanh %199 : vector<8x128xf32>
    %206 = vector.extract_strided_slice %204 {offsets = [0, 0], sizes = [8, 32], strides = [1, 1]} : vector<8x128xf32> to vector<8x32xf32>
    %207 = vector.extract_strided_slice %204 {offsets = [0, 32], sizes = [8, 32], strides = [1, 1]} : vector<8x128xf32> to vector<8x32xf32>
    %208 = vector.extract_strided_slice %204 {offsets = [0, 96], sizes = [8, 32], strides = [1, 1]} : vector<8x128xf32> to vector<8x32xf32>
    %209 = vector.extract_strided_slice %205 {offsets = [0, 64], sizes = [8, 32], strides = [1, 1]} : vector<8x128xf32> to vector<8x32xf32>
    %210 = arith.mulf %207, %174 : vector<8x32xf32>
    %211 = arith.mulf %206, %209 : vector<8x32xf32>
    %212 = arith.addf %210, %211 : vector<8x32xf32>
    %213 = math.tanh %212 : vector<8x32xf32>
    %214 = arith.mulf %208, %213 : vector<8x32xf32>
    %c24 = arith.constant 24 : index
    %c0_41 = arith.constant 0 : index
    %215 = vector.load %arg5[%c24, %c0_41] : memref<64x32xf32, #tpu.memory_space<vmem>>, vector<8x32xf32>
    tpu.vector_store %arg5[%c24, %c0_41], %214 {strides = array<i32>} : memref<64x32xf32, #tpu.memory_space<vmem>>, vector<8x32xf32>,
    %216 = vector.extract_strided_slice %57 {offsets = [32, 0], sizes = [8, 128], strides = [1, 1]} : vector<64x128xf32> to vector<8x128xf32>
    %cst_42 = arith.constant dense<0.000000e+00> : vector<8x128xf32>
    %217 = tpu.matmul %195, %0, %cst_42 {dimension_numbers = #tpu.dot_dimension_numbers<[1], [0], [0], [1], [0, 0, 1, 1], [], []>} : vector<8x32xf32>, vector<32x128xf32>, vector<8x128xf32> -> vector<8x128xf32>
    %218 = arith.addf %216, %217 : vector<8x128xf32>
    %219 = arith.negf %218 : vector<8x128xf32>
    %220 = math.exp %219 : vector<8x128xf32>
    %cst_43 = arith.constant 1.000000e+00 : f32
    %221 = vector.broadcast %cst_43 : f32 to vector<8x128xf32>
    %222 = arith.addf %221, %220 : vector<8x128xf32>
    %223 = arith.divf %221, %222 : vector<8x128xf32>
    %224 = math.tanh %218 : vector<8x128xf32>
    %225 = vector.extract_strided_slice %223 {offsets = [0, 0], sizes = [8, 32], strides = [1, 1]} : vector<8x128xf32> to vector<8x32xf32>
    %226 = vector.extract_strided_slice %223 {offsets = [0, 32], sizes = [8, 32], strides = [1, 1]} : vector<8x128xf32> to vector<8x32xf32>
    %227 = vector.extract_strided_slice %223 {offsets = [0, 96], sizes = [8, 32], strides = [1, 1]} : vector<8x128xf32> to vector<8x32xf32>
    %228 = vector.extract_strided_slice %224 {offsets = [0, 64], sizes = [8, 32], strides = [1, 1]} : vector<8x128xf32> to vector<8x32xf32>
    %229 = arith.mulf %226, %193 : vector<8x32xf32>
    %230 = arith.mulf %225, %228 : vector<8x32xf32>
    %231 = arith.addf %229, %230 : vector<8x32xf32>
    %232 = math.tanh %231 : vector<8x32xf32>
    %233 = arith.mulf %227, %232 : vector<8x32xf32>
    %cst_44 = arith.constant dense<0.000000e+00> : vector<8x128xf32>
    %234 = tpu.matmul %233, %1, %cst_44 {dimension_numbers = #tpu.dot_dimension_numbers<[1], [0], [0], [1], [0, 0, 1, 1], [], []>} : vector<8x32xf32>, vector<32x128xf32>, vector<8x128xf32> -> vector<8x128xf32>
    %cst_45 = arith.constant dense<0.000000e+00> : vector<8x128xf32>
    %235 = tpu.matmul %214, %2, %cst_45 {dimension_numbers = #tpu.dot_dimension_numbers<[1], [0], [0], [1], [0, 0, 1, 1], [], []>} : vector<8x32xf32>, vector<32x128xf32>, vector<8x128xf32> -> vector<8x128xf32>
    %236 = arith.addf %234, %235 : vector<8x128xf32>
    %237 = arith.addf %236, %59 : vector<8x128xf32>
    %238 = arith.negf %237 : vector<8x128xf32>
    %239 = math.exp %238 : vector<8x128xf32>
    %cst_46 = arith.constant 1.000000e+00 : f32
    %240 = vector.broadcast %cst_46 : f32 to vector<8x128xf32>
    %241 = arith.addf %240, %239 : vector<8x128xf32>
    %242 = arith.divf %240, %241 : vector<8x128xf32>
    %243 = math.tanh %237 : vector<8x128xf32>
    %244 = vector.extract_strided_slice %242 {offsets = [0, 0], sizes = [8, 32], strides = [1, 1]} : vector<8x128xf32> to vector<8x32xf32>
    %245 = vector.extract_strided_slice %242 {offsets = [0, 32], sizes = [8, 32], strides = [1, 1]} : vector<8x128xf32> to vector<8x32xf32>
    %246 = vector.extract_strided_slice %242 {offsets = [0, 96], sizes = [8, 32], strides = [1, 1]} : vector<8x128xf32> to vector<8x32xf32>
    %247 = vector.extract_strided_slice %243 {offsets = [0, 64], sizes = [8, 32], strides = [1, 1]} : vector<8x128xf32> to vector<8x32xf32>
    %248 = arith.mulf %245, %212 : vector<8x32xf32>
    %249 = arith.mulf %244, %247 : vector<8x32xf32>
    %250 = arith.addf %248, %249 : vector<8x32xf32>
    %251 = math.tanh %250 : vector<8x32xf32>
    %252 = arith.mulf %246, %251 : vector<8x32xf32>
    %c32_47 = arith.constant 32 : index
    %c0_48 = arith.constant 0 : index
    %253 = vector.load %arg5[%c32_47, %c0_48] : memref<64x32xf32, #tpu.memory_space<vmem>>, vector<8x32xf32>
    tpu.vector_store %arg5[%c32_47, %c0_48], %252 {strides = array<i32>} : memref<64x32xf32, #tpu.memory_space<vmem>>, vector<8x32xf32>,
    %254 = vector.extract_strided_slice %57 {offsets = [40, 0], sizes = [8, 128], strides = [1, 1]} : vector<64x128xf32> to vector<8x128xf32>
    %cst_49 = arith.constant dense<0.000000e+00> : vector<8x128xf32>
    %255 = tpu.matmul %233, %0, %cst_49 {dimension_numbers = #tpu.dot_dimension_numbers<[1], [0], [0], [1], [0, 0, 1, 1], [], []>} : vector<8x32xf32>, vector<32x128xf32>, vector<8x128xf32> -> vector<8x128xf32>
    %256 = arith.addf %254, %255 : vector<8x128xf32>
    %257 = arith.negf %256 : vector<8x128xf32>
    %258 = math.exp %257 : vector<8x128xf32>
    %cst_50 = arith.constant 1.000000e+00 : f32
    %259 = vector.broadcast %cst_50 : f32 to vector<8x128xf32>
    %260 = arith.addf %259, %258 : vector<8x128xf32>
    %261 = arith.divf %259, %260 : vector<8x128xf32>
    %262 = math.tanh %256 : vector<8x128xf32>
    %263 = vector.extract_strided_slice %261 {offsets = [0, 0], sizes = [8, 32], strides = [1, 1]} : vector<8x128xf32> to vector<8x32xf32>
    %264 = vector.extract_strided_slice %261 {offsets = [0, 32], sizes = [8, 32], strides = [1, 1]} : vector<8x128xf32> to vector<8x32xf32>
    %265 = vector.extract_strided_slice %261 {offsets = [0, 96], sizes = [8, 32], strides = [1, 1]} : vector<8x128xf32> to vector<8x32xf32>
    %266 = vector.extract_strided_slice %262 {offsets = [0, 64], sizes = [8, 32], strides = [1, 1]} : vector<8x128xf32> to vector<8x32xf32>
    %267 = arith.mulf %264, %231 : vector<8x32xf32>
    %268 = arith.mulf %263, %266 : vector<8x32xf32>
    %269 = arith.addf %267, %268 : vector<8x32xf32>
    %270 = math.tanh %269 : vector<8x32xf32>
    %271 = arith.mulf %265, %270 : vector<8x32xf32>
    %cst_51 = arith.constant dense<0.000000e+00> : vector<8x128xf32>
    %272 = tpu.matmul %271, %1, %cst_51 {dimension_numbers = #tpu.dot_dimension_numbers<[1], [0], [0], [1], [0, 0, 1, 1], [], []>} : vector<8x32xf32>, vector<32x128xf32>, vector<8x128xf32> -> vector<8x128xf32>
    %cst_52 = arith.constant dense<0.000000e+00> : vector<8x128xf32>
    %273 = tpu.matmul %252, %2, %cst_52 {dimension_numbers = #tpu.dot_dimension_numbers<[1], [0], [0], [1], [0, 0, 1, 1], [], []>} : vector<8x32xf32>, vector<32x128xf32>, vector<8x128xf32> -> vector<8x128xf32>
    %274 = arith.addf %272, %273 : vector<8x128xf32>
    %275 = arith.addf %274, %59 : vector<8x128xf32>
    %276 = arith.negf %275 : vector<8x128xf32>
    %277 = math.exp %276 : vector<8x128xf32>
    %cst_53 = arith.constant 1.000000e+00 : f32
    %278 = vector.broadcast %cst_53 : f32 to vector<8x128xf32>
    %279 = arith.addf %278, %277 : vector<8x128xf32>
    %280 = arith.divf %278, %279 : vector<8x128xf32>
    %281 = math.tanh %275 : vector<8x128xf32>
    %282 = vector.extract_strided_slice %280 {offsets = [0, 0], sizes = [8, 32], strides = [1, 1]} : vector<8x128xf32> to vector<8x32xf32>
    %283 = vector.extract_strided_slice %280 {offsets = [0, 32], sizes = [8, 32], strides = [1, 1]} : vector<8x128xf32> to vector<8x32xf32>
    %284 = vector.extract_strided_slice %280 {offsets = [0, 96], sizes = [8, 32], strides = [1, 1]} : vector<8x128xf32> to vector<8x32xf32>
    %285 = vector.extract_strided_slice %281 {offsets = [0, 64], sizes = [8, 32], strides = [1, 1]} : vector<8x128xf32> to vector<8x32xf32>
    %286 = arith.mulf %283, %250 : vector<8x32xf32>
    %287 = arith.mulf %282, %285 : vector<8x32xf32>
    %288 = arith.addf %286, %287 : vector<8x32xf32>
    %289 = math.tanh %288 : vector<8x32xf32>
    %290 = arith.mulf %284, %289 : vector<8x32xf32>
    %c40 = arith.constant 40 : index
    %c0_54 = arith.constant 0 : index
    %291 = vector.load %arg5[%c40, %c0_54] : memref<64x32xf32, #tpu.memory_space<vmem>>, vector<8x32xf32>
    tpu.vector_store %arg5[%c40, %c0_54], %290 {strides = array<i32>} : memref<64x32xf32, #tpu.memory_space<vmem>>, vector<8x32xf32>,
    %292 = vector.extract_strided_slice %57 {offsets = [48, 0], sizes = [8, 128], strides = [1, 1]} : vector<64x128xf32> to vector<8x128xf32>
    %cst_55 = arith.constant dense<0.000000e+00> : vector<8x128xf32>
    %293 = tpu.matmul %271, %0, %cst_55 {dimension_numbers = #tpu.dot_dimension_numbers<[1], [0], [0], [1], [0, 0, 1, 1], [], []>} : vector<8x32xf32>, vector<32x128xf32>, vector<8x128xf32> -> vector<8x128xf32>
    %294 = arith.addf %292, %293 : vector<8x128xf32>
    %295 = arith.negf %294 : vector<8x128xf32>
    %296 = math.exp %295 : vector<8x128xf32>
    %cst_56 = arith.constant 1.000000e+00 : f32
    %297 = vector.broadcast %cst_56 : f32 to vector<8x128xf32>
    %298 = arith.addf %297, %296 : vector<8x128xf32>
    %299 = arith.divf %297, %298 : vector<8x128xf32>
    %300 = math.tanh %294 : vector<8x128xf32>
    %301 = vector.extract_strided_slice %299 {offsets = [0, 0], sizes = [8, 32], strides = [1, 1]} : vector<8x128xf32> to vector<8x32xf32>
    %302 = vector.extract_strided_slice %299 {offsets = [0, 32], sizes = [8, 32], strides = [1, 1]} : vector<8x128xf32> to vector<8x32xf32>
    %303 = vector.extract_strided_slice %299 {offsets = [0, 96], sizes = [8, 32], strides = [1, 1]} : vector<8x128xf32> to vector<8x32xf32>
    %304 = vector.extract_strided_slice %300 {offsets = [0, 64], sizes = [8, 32], strides = [1, 1]} : vector<8x128xf32> to vector<8x32xf32>
    %305 = arith.mulf %302, %269 : vector<8x32xf32>
    %306 = arith.mulf %301, %304 : vector<8x32xf32>
    %307 = arith.addf %305, %306 : vector<8x32xf32>
    %308 = math.tanh %307 : vector<8x32xf32>
    %309 = arith.mulf %303, %308 : vector<8x32xf32>
    %cst_57 = arith.constant dense<0.000000e+00> : vector<8x128xf32>
    %310 = tpu.matmul %309, %1, %cst_57 {dimension_numbers = #tpu.dot_dimension_numbers<[1], [0], [0], [1], [0, 0, 1, 1], [], []>} : vector<8x32xf32>, vector<32x128xf32>, vector<8x128xf32> -> vector<8x128xf32>
    %cst_58 = arith.constant dense<0.000000e+00> : vector<8x128xf32>
    %311 = tpu.matmul %290, %2, %cst_58 {dimension_numbers = #tpu.dot_dimension_numbers<[1], [0], [0], [1], [0, 0, 1, 1], [], []>} : vector<8x32xf32>, vector<32x128xf32>, vector<8x128xf32> -> vector<8x128xf32>
    %312 = arith.addf %310, %311 : vector<8x128xf32>
    %313 = arith.addf %312, %59 : vector<8x128xf32>
    %314 = arith.negf %313 : vector<8x128xf32>
    %315 = math.exp %314 : vector<8x128xf32>
    %cst_59 = arith.constant 1.000000e+00 : f32
    %316 = vector.broadcast %cst_59 : f32 to vector<8x128xf32>
    %317 = arith.addf %316, %315 : vector<8x128xf32>
    %318 = arith.divf %316, %317 : vector<8x128xf32>
    %319 = math.tanh %313 : vector<8x128xf32>
    %320 = vector.extract_strided_slice %318 {offsets = [0, 0], sizes = [8, 32], strides = [1, 1]} : vector<8x128xf32> to vector<8x32xf32>
    %321 = vector.extract_strided_slice %318 {offsets = [0, 32], sizes = [8, 32], strides = [1, 1]} : vector<8x128xf32> to vector<8x32xf32>
    %322 = vector.extract_strided_slice %318 {offsets = [0, 96], sizes = [8, 32], strides = [1, 1]} : vector<8x128xf32> to vector<8x32xf32>
    %323 = vector.extract_strided_slice %319 {offsets = [0, 64], sizes = [8, 32], strides = [1, 1]} : vector<8x128xf32> to vector<8x32xf32>
    %324 = arith.mulf %321, %288 : vector<8x32xf32>
    %325 = arith.mulf %320, %323 : vector<8x32xf32>
    %326 = arith.addf %324, %325 : vector<8x32xf32>
    %327 = math.tanh %326 : vector<8x32xf32>
    %328 = arith.mulf %322, %327 : vector<8x32xf32>
    %c48 = arith.constant 48 : index
    %c0_60 = arith.constant 0 : index
    %329 = vector.load %arg5[%c48, %c0_60] : memref<64x32xf32, #tpu.memory_space<vmem>>, vector<8x32xf32>
    tpu.vector_store %arg5[%c48, %c0_60], %328 {strides = array<i32>} : memref<64x32xf32, #tpu.memory_space<vmem>>, vector<8x32xf32>,
    %330 = vector.extract_strided_slice %57 {offsets = [56, 0], sizes = [8, 128], strides = [1, 1]} : vector<64x128xf32> to vector<8x128xf32>
    %cst_61 = arith.constant dense<0.000000e+00> : vector<8x128xf32>
    %331 = tpu.matmul %309, %0, %cst_61 {dimension_numbers = #tpu.dot_dimension_numbers<[1], [0], [0], [1], [0, 0, 1, 1], [], []>} : vector<8x32xf32>, vector<32x128xf32>, vector<8x128xf32> -> vector<8x128xf32>
    %332 = arith.addf %330, %331 : vector<8x128xf32>
    %333 = arith.negf %332 : vector<8x128xf32>
    %334 = math.exp %333 : vector<8x128xf32>
    %cst_62 = arith.constant 1.000000e+00 : f32
    %335 = vector.broadcast %cst_62 : f32 to vector<8x128xf32>
    %336 = arith.addf %335, %334 : vector<8x128xf32>
    %337 = arith.divf %335, %336 : vector<8x128xf32>
    %338 = math.tanh %332 : vector<8x128xf32>
    %339 = vector.extract_strided_slice %337 {offsets = [0, 0], sizes = [8, 32], strides = [1, 1]} : vector<8x128xf32> to vector<8x32xf32>
    %340 = vector.extract_strided_slice %337 {offsets = [0, 32], sizes = [8, 32], strides = [1, 1]} : vector<8x128xf32> to vector<8x32xf32>
    %341 = vector.extract_strided_slice %337 {offsets = [0, 96], sizes = [8, 32], strides = [1, 1]} : vector<8x128xf32> to vector<8x32xf32>
    %342 = vector.extract_strided_slice %338 {offsets = [0, 64], sizes = [8, 32], strides = [1, 1]} : vector<8x128xf32> to vector<8x32xf32>
    %343 = arith.mulf %340, %307 : vector<8x32xf32>
    %344 = arith.mulf %339, %342 : vector<8x32xf32>
    %345 = arith.addf %343, %344 : vector<8x32xf32>
    %346 = math.tanh %345 : vector<8x32xf32>
    %347 = arith.mulf %341, %346 : vector<8x32xf32>
    %cst_63 = arith.constant dense<0.000000e+00> : vector<8x128xf32>
    %348 = tpu.matmul %347, %1, %cst_63 {dimension_numbers = #tpu.dot_dimension_numbers<[1], [0], [0], [1], [0, 0, 1, 1], [], []>} : vector<8x32xf32>, vector<32x128xf32>, vector<8x128xf32> -> vector<8x128xf32>
    %cst_64 = arith.constant dense<0.000000e+00> : vector<8x128xf32>
    %349 = tpu.matmul %328, %2, %cst_64 {dimension_numbers = #tpu.dot_dimension_numbers<[1], [0], [0], [1], [0, 0, 1, 1], [], []>} : vector<8x32xf32>, vector<32x128xf32>, vector<8x128xf32> -> vector<8x128xf32>
    %350 = arith.addf %348, %349 : vector<8x128xf32>
    %351 = arith.addf %350, %59 : vector<8x128xf32>
    %352 = arith.negf %351 : vector<8x128xf32>
    %353 = math.exp %352 : vector<8x128xf32>
    %cst_65 = arith.constant 1.000000e+00 : f32
    %354 = vector.broadcast %cst_65 : f32 to vector<8x128xf32>
    %355 = arith.addf %354, %353 : vector<8x128xf32>
    %356 = arith.divf %354, %355 : vector<8x128xf32>
    %357 = math.tanh %351 : vector<8x128xf32>
    %358 = vector.extract_strided_slice %356 {offsets = [0, 0], sizes = [8, 32], strides = [1, 1]} : vector<8x128xf32> to vector<8x32xf32>
    %359 = vector.extract_strided_slice %356 {offsets = [0, 32], sizes = [8, 32], strides = [1, 1]} : vector<8x128xf32> to vector<8x32xf32>
    %360 = vector.extract_strided_slice %356 {offsets = [0, 96], sizes = [8, 32], strides = [1, 1]} : vector<8x128xf32> to vector<8x32xf32>
    %361 = vector.extract_strided_slice %357 {offsets = [0, 64], sizes = [8, 32], strides = [1, 1]} : vector<8x128xf32> to vector<8x32xf32>
    %362 = arith.mulf %359, %326 : vector<8x32xf32>
    %363 = arith.mulf %358, %361 : vector<8x32xf32>
    %364 = arith.addf %362, %363 : vector<8x32xf32>
    %365 = math.tanh %364 : vector<8x32xf32>
    %366 = arith.mulf %360, %365 : vector<8x32xf32>
    %c56 = arith.constant 56 : index
    %c0_66 = arith.constant 0 : index
    %367 = vector.load %arg5[%c56, %c0_66] : memref<64x32xf32, #tpu.memory_space<vmem>>, vector<8x32xf32>
    tpu.vector_store %arg5[%c56, %c0_66], %366 {strides = array<i32>} : memref<64x32xf32, #tpu.memory_space<vmem>>, vector<8x32xf32>,
    %c0_67 = arith.constant 0 : index
    %c0_68 = arith.constant 0 : index
    %368 = vector.load %arg5[%c0_67, %c0_68] : memref<64x32xf32, #tpu.memory_space<vmem>>, vector<64x32xf32>
    %c0_69 = arith.constant 0 : index
    %c0_70 = arith.constant 0 : index
    %369 = vector.load %arg3[%c0_69, %c0_70] : memref<104x4xf32, #tpu.memory_space<vmem>>, vector<32x4xf32>
    %cst_71 = arith.constant dense<0.000000e+00> : vector<64x4xf32>
    %370 = tpu.matmul %368, %369, %cst_71 {dimension_numbers = #tpu.dot_dimension_numbers<[1], [0], [0], [1], [0, 0, 1, 1], [], []>} : vector<64x32xf32>, vector<32x4xf32>, vector<64x4xf32> -> vector<64x4xf32>
    %c0_72 = arith.constant 0 : index
    %c0_73 = arith.constant 0 : index
    %371 = vector.load %arg1[%c0_72, %c0_73] : memref<64x64xf32, #tpu.memory_space<vmem>>, vector<64x64xf32>
    %c32_74 = arith.constant 32 : index
    %c0_75 = arith.constant 0 : index
    %372 = vector.load %arg3[%c32_74, %c0_75] : memref<104x4xf32, #tpu.memory_space<vmem>>, vector<64x4xf32>
    %cst_76 = arith.constant dense<0.000000e+00> : vector<64x4xf32>
    %373 = tpu.matmul %371, %372, %cst_76 {dimension_numbers = #tpu.dot_dimension_numbers<[1], [0], [0], [1], [0, 0, 1, 1], [], []>} : vector<64x64xf32>, vector<64x4xf32>, vector<64x4xf32> -> vector<64x4xf32>
    %374 = arith.addf %370, %373 : vector<64x4xf32>
    %c96_77 = arith.constant 96 : index
    %c0_78 = arith.constant 0 : index
    %375 = vector.load %arg3[%c96_77, %c0_78] : memref<104x4xf32, #tpu.memory_space<vmem>>, vector<1x4xf32>
    %376 = vector.broadcast %375 : vector<1x4xf32> to vector<64x4xf32>
    %377 = arith.addf %374, %376 : vector<64x4xf32>
    %c0_79 = arith.constant 0 : index
    %c0_80 = arith.constant 0 : index
    %378 = vector.load %arg4[%c0_79, %c0_80] : memref<64x4xf32, #tpu.memory_space<vmem>>, vector<64x4xf32>
    tpu.vector_store %arg4[%c0_79, %c0_80], %377 {strides = array<i32>} : memref<64x4xf32, #tpu.memory_space<vmem>>, vector<64x4xf32>,
    return
  }
}

</mosaic_0001>

<bundles_post_ra>
// kernel: tpu_custom_call.1
= control target key start
LH: loop header
LB: loop body
LE: loop exit
PB: predicated region body
PF: predicated region fallthrough
CT: control target
= control target key end

     0   :  { %9 = vsyncpa [#allocation4], 0  ;;  %s3470_s15 = smov [#allocation3]   ;;  %s4170_s0 = inlined_call_operand.vmem [shape: f32[64,4], index: 0, kind: input, shape index: {}]   ;;  %s4171_s1 = inlined_call_operand.hbm [shape: f32[64,64], index: 1, kind: input, shape index: {}]   ;;  %s4172_s2 = inlined_call_operand.vmem [shape: f32[120,128], index: 2, kind: input, shape index: {}]   ;;  %s4173_s3 = inlined_call_operand.vmem [shape: f32[104,4], index: 3, kind: input, shape index: {}]   ;;  %s4174_s4 = inlined_call_operand.vmem [shape: f32[64,4], index: 4, kind: output, shape index: {}]  }
   0x1   :  { %s17_s16 = sshll.u32 %s3470_s15, 4  ;;  %s18_s16 = int_to_ptr.vmem [resolvable:$true] %s17_s16 }
   0x2   :  { %s3456_s17 = scalar_lea.vmem %s18_s16, 1024  ;;  %p3461_p1 = scmp.lt.s32.totalorder %s18_s16, %s18_s16 }
   0x3   :  { %p3457_p0 = scmp.ne.s32.totalorder %s18_s16, %s3456_s17  ;;  %p3462_p2 = scmp.lt.s32.totalorder %s3456_s17, %s3456_s17 }
   0x5   :  { %p3463_p3 = por %p3462_p2, %p3461_p1 }
   0x7   :  { %p3464_p4 = pnand %p3463_p3, %p3457_p0 }
   0x9   :  { %3467 = shalt.err (!%p3464_p4)
}
   0xa   :  { %s3471_s18 = smov 128   ;;  %s3472_s19 = smov 8  }
   0xb   :  { %23 = dma.hbm_to_vmem [thread:$0]  %s4171_s1, 1024, %s18_s16, [#allocation4], %s3471_s18, %s3471_s18, %s3472_s19  }
   0xc   :  { %3468 = dma.done.wait [#allocation4], 1024  }
   0xd   :  { %3469 = vsyncadd [#allocation4], 4294966272  ;;  %v46_v0 = vld [vmem:[%s4170_s0] sm:$0xff]  ;;  %v47_v1 = vld [vmem:[%s4170_s0 + $0x8] sm:$0xff]  ;;  %vm61_vm0 = vcmask 31744   ;;  %v3473_v16 = vmov 0  }
   0xe   :  { %v48_v2 = vld [vmem:[%s4170_s0 + $0x10] sm:$0xff]  ;;  %v54_v3 = vadd.f32 %v47_v1, %v46_v0  ;;  %v49_v4 = vld [vmem:[%s4170_s0 + $0x18] sm:$0xff]  ;;  %v50_v6 = vld [vmem:[%s4170_s0 + $0x20] sm:$0xff]  ;;  %3302 = vset.pattern.permute.xlu0 %v3473_v16  ;;  %3303 = vset.pattern.permute.xlu1 %v3473_v16  ;;  %v3474_v45 = vmov 0.0   ;;  %vm141_vm1 = vcmask 1043456   ;;  %vm3475_vm2 = vmmov 0  }
   0xf   :  { %v51_v8 = vld [vmem:[%s4170_s0 + $0x28] sm:$0xff]  ;;  %v52_v10 = vld [vmem:[%s4170_s0 + $0x30] sm:$0xff]  ;;  %v53_v12 = vld [vmem:[%s4170_s0 + $0x38] sm:$0xff]  ;;  %2982 = vmatprep.subr.mxu1 %v3474_v45  ;;  %2990 = vmatprep.mubr.msk.f32.mxu1 %vm3475_vm2, %v3474_v45  ;;  %s3476_s22 = smov 64   ;;  %s3477_s23 = smov 32   ;;  %vm254_vm3 = vcmask 261120  }
  0x10   :  { %v55_v5 = vadd.f32 %v54_v3, %v48_v2  ;;  %v3535_v44 = vld [vmem:[%s4172_s2 + $0x18] sm:$0xff]  ;;  %v3543_v49 = vld [vmem:[%s4172_s2 + $0x10] sm:$0xff]  ;;  %v43_v50 = vld [vmem:[%s4172_s2 + $0x60] sm:$0xf]  ;;  %vm2460_vm4 = vcmask 523264  }
  0x11   :  { %2983 = vmatpush3.msra.mxu1 %v3535_v44  ;;  %2968 = vmatprep.subr.msk.mxu0 %vm141_vm1, %v43_v50  ;;  %v3553_v51 = vld [vmem:[%s4172_s2 + $0x8] sm:$0xff]  ;;  %v3561_v53 = vld [vmem:[%s4172_s2] sm:$0xff] }
  0x12   :  { %v56_v7 = vadd.f32 %v55_v5, %v49_v4  ;;  %2984 = vmatprep.subr.mxu1 %v3474_v45  ;;  %2969 = vmatpush3.msk.msra.mxu0 %vm141_vm1, %v43_v50 }
  0x13   :  { %2985 = vmatpush3.msra.mxu1 %v3543_v49  ;;  %3004 = vmatprep.subr.mxu0 %v3474_v45 }
  0x14   :  { %v57_v9 = vadd.f32 %v56_v7, %v50_v6  ;;  %2986 = vmatprep.subr.mxu1 %v3474_v45 }
  0x15   :  { %2987 = vmatpush3.msra.mxu1 %v3553_v51 }
  0x16   :  { %v58_v11 = vadd.f32 %v57_v9, %v51_v8  ;;  %2988 = vmatprep.subr.mxu1 %v3474_v45 }
  0x17   :  { %2989 = vmatpush3.msra.mxu1 %v3561_v53 }
  0x18   :  { %v59_v13 = vadd.f32 %v58_v11, %v52_v10  ;;  %2991 = vmatmul.mubr.f32.vlgmr.msra.gmra.mxu1 %v3474_v45  ;;  %2993 = vmatprep.subr.mxu1 %v3474_v45 }
  0x19   :  { %3001 = vmatprep.mubr.msk.f32.mxu1 %vm3475_vm2, %v3474_v45 }
  0x1a   :  { %v60_v14 = vadd.f32 %v59_v13, %v53_v12 }
  0x1c   :  { %v62_v15 = vsel %vm61_vm0, %v60_v14, 0.0 }
  0x1d   :  { %63 = vadd.xlane.f32.xlu0 %v62_v15 }
  0xa6   :  { %v64_v17 = vpop.xlane.xlu0 %63 }
  0xa7   :  { %v65_v18 = vmul.f32 0.03125, %v64_v17 }
  0xa9   :  { %68 = vperm.xlu0 %3302, %v65_v18  }
  0xd8   :  { %v324_v63 = vpop.f32.mrf.mxu1 }
 0x124   :  { %v69_v19 = vpop.permute.xlu0 %68 }
 0x125   :  { %v71_v20 = vsub.f32 %v46_v0, %v69_v19  ;;  %v72_v21 = vsub.f32 %v47_v1, %v69_v19  ;;  %v73_v22 = vsub.f32 %v48_v2, %v69_v19  ;;  %v74_v23 = vsub.f32 %v49_v4, %v69_v19  ;;  %v2992_v0 = vpop.f32.mrf.mxu1  ;;  %v2745_v1 = vld [vmem:[%s4172_s2 + $0x68] ss:$0 sm:$0xff] }
 0x126   :  { %v75_v26 = vsub.f32 %v50_v6, %v69_v19  ;;  %v76_v29 = vsub.f32 %v51_v8, %v69_v19  ;;  %v77_v32 = vsub.f32 %v52_v10, %v69_v19  ;;  %v78_v35 = vsub.f32 %v53_v12, %v69_v19 }
 0x127   :  { %v79_v24 = vmul.f32 %v71_v20, %v71_v20  ;;  %v80_v25 = vmul.f32 %v72_v21, %v72_v21  ;;  %v81_v27 = vmul.f32 %v73_v22, %v73_v22  ;;  %v82_v30 = vmul.f32 %v74_v23, %v74_v23 }
 0x128   :  { %v83_v33 = vmul.f32 %v75_v26, %v75_v26  ;;  %v84_v36 = vmul.f32 %v76_v29, %v76_v29  ;;  %v85_v38 = vmul.f32 %v77_v32, %v77_v32  ;;  %v86_v40 = vmul.f32 %v78_v35, %v78_v35 }
 0x129   :  { %v87_v28 = vadd.f32 %v80_v25, %v79_v24 }
 0x12b   :  { %v88_v31 = vadd.f32 %v87_v28, %v81_v27  ;;  %v3603_v27 = vld [vmem:[%s4172_s2 + $0x38] sm:$0xff] }
 0x12c   :  { %v3608_v28 = vld [vmem:[%s4172_s2 + $0x58] sm:$0xff] }
 0x12d   :  { %v89_v34 = vadd.f32 %v88_v31, %v82_v30  ;;  %2994 = vmatpush3.msra.mxu1 %v3608_v28  ;;  %v3620_v30 = vld [vmem:[%s4172_s2 + $0x30] sm:$0xff]  ;;  %v3627_v31 = vld [vmem:[%s4172_s2 + $0x48] sm:$0xff] }
 0x12e   :  { %2995 = vmatprep.subr.mxu1 %v3474_v45 }
 0x12f   :  { %v90_v37 = vadd.f32 %v89_v34, %v83_v33  ;;  %v3640_v33 = vld [vmem:[%s4172_s2 + $0x40] sm:$0xff] }
 0x130   :  { %v3646_v34 = vld [vmem:[%s4172_s2 + $0x20] sm:$0xff] }
 0x131   :  { %v91_v39 = vadd.f32 %v90_v37, %v84_v36 }
 0x133   :  { %v92_v41 = vadd.f32 %v91_v39, %v85_v38 }
 0x135   :  { %v93_v42 = vadd.f32 %v92_v41, %v86_v40 }
 0x137   :  { %v94_v43 = vsel %vm61_vm0, %v93_v42, 0.0  ;;  %v3696_v42 = vld [vmem:[%s4172_s2 + $0x70] ss:$0 sm:$0xff] }
 0x138   :  { %95 = vadd.xlane.f32.xlu1 %v94_v43 }
 0x1c1   :  { %v96_v46 = vpop.xlane.xlu1 %95 }
 0x1c2   :  { %v97_v47 = vmul.f32 0.03125, %v96_v46 }
 0x1c4   :  { %v98_v48 = vadd.f32 1e-05, %v97_v47 }
 0x1c6   :  { %3304 = vrsqrt.f32 %v98_v48 }
 0x1d3   :  { %v3305_v52 = vpop.eup %3304 }
 0x1d4   :  { %102 = vperm.xlu1 %3303, %v3305_v52  }
 0x24f   :  { %v103_v54 = vpop.permute.xlu1 %102 }
 0x250   :  { %v105_v55 = vmul.f32 %v103_v54, %v71_v20  ;;  %v106_v56 = vmul.f32 %v103_v54, %v72_v21  ;;  %v107_v57 = vmul.f32 %v103_v54, %v73_v22  ;;  %v108_v58 = vmul.f32 %v103_v54, %v74_v23 }
 0x251   :  { %v109_v59 = vmul.f32 %v103_v54, %v75_v26  ;;  %v110_v60 = vmul.f32 %v103_v54, %v76_v29  ;;  %v111_v61 = vmul.f32 %v103_v54, %v77_v32  ;;  %v112_v62 = vmul.f32 %v103_v54, %v78_v35  ;;  %v3613_v29 = vld [vmem:[%s4172_s2 + $0x50] sm:$0xff]  ;;  %v3632_v32 = vld [vmem:[%s4172_s2 + $0x28] sm:$0xff] }
 0x252   :  { %2970 = vmatprep.mubr.msk.f32.mxu0 %vm61_vm0, %v105_v55  ;;  %2996 = vmatpush3.msra.mxu1 %v3613_v29 }
 0x253   :  { %2971 = vmatmul.mubr.msk.f32.vlgmr.msra.gmra.mxu0 %vm61_vm0, %v106_v56  ;;  %2997 = vmatprep.subr.mxu1 %v3474_v45 }
 0x254   :  { %2973 = vmatprep.mubr.msk.f32.mxu0 %vm61_vm0, %v107_v57  ;;  %3005 = vmatpush3.msra.mxu0 %v3603_v27 }
 0x255   :  { %3006 = vmatprep.subr.mxu0 %v3474_v45  ;;  %2998 = vmatpush3.msra.mxu1 %v3627_v31 }
 0x256   :  { %3007 = vmatpush3.msra.mxu0 %v3620_v30  ;;  %2999 = vmatprep.subr.mxu1 %v3474_v45 }
 0x257   :  { %2974 = vmatmul.mubr.msk.f32.gmra.mxu0 %vm61_vm0, %v108_v58  ;;  %3008 = vmatprep.subr.mxu0 %v3474_v45 }
 0x258   :  { %2976 = vmatprep.mubr.msk.f32.mxu0 %vm61_vm0, %v109_v59  ;;  %3009 = vmatpush3.msra.mxu0 %v3632_v32 }
 0x259   :  { %3010 = vmatprep.subr.mxu0 %v3474_v45  ;;  %3000 = vmatpush3.msra.mxu1 %v3640_v33 }
 0x25a   :  { %3011 = vmatpush3.msra.mxu0 %v3646_v34  ;;  %3015 = vmatprep.subr.mxu1 %v3474_v45 }
 0x25b   :  { %2977 = vmatmul.mubr.msk.f32.gmra.mxu0 %vm61_vm0, %v110_v60  ;;  %3002 = vmatmul.mubr.f32.vlgmr.msra.gmra.mxu1 %v3474_v45 }
 0x25c   :  { %2979 = vmatprep.mubr.msk.f32.mxu0 %vm61_vm0, %v111_v61  ;;  %3016 = vmatpush3.msra.mxu1 %v3535_v44 }
 0x25d   :  { %3023 = vmatprep.mubr.msk.f32.mxu1 %vm3475_vm2, %v3474_v45  ;;  %3017 = vmatprep.subr.mxu1 %v3474_v45 }
 0x25e   :  { %3026 = vmatprep.subr.mxu0 %v3474_v45  ;;  %3018 = vmatpush3.msra.mxu1 %v3543_v49 }
 0x25f   :  { %2980 = vmatmul.mubr.msk.f32.gmra.mxu0 %vm61_vm0, %v112_v62  ;;  %3019 = vmatprep.subr.mxu1 %v3474_v45 }
 0x260   :  { %3012 = vmatprep.mubr.msk.f32.mxu0 %vm3475_vm2, %v3474_v45  ;;  %3020 = vmatpush3.msra.mxu1 %v3553_v51 }
 0x261   :  { %3021 = vmatprep.subr.mxu1 %v3474_v45 }
 0x262   :  { %3022 = vmatpush3.msra.mxu1 %v3561_v53 }
 0x263   :  { %3037 = vmatprep.subr.mxu1 %v3474_v45 }
 0x313   :  { %v2972_v2 = vpop.f32.mrf.mxu0 }
 0x314   :  { %v3583_v3 = vadd.f32 %v2972_v2, %v2745_v1 }
 0x315   :  { %v211_v4 = vpop.f32.mrf.mxu0 }
 0x316   :  { %v212_v5 = vadd.f32 %v2745_v1, %v211_v4 }
 0x317   :  { %v2975_v6 = vpop.f32.mrf.mxu0 }
 0x318   :  { %v328_v7 = vadd.f32 %v324_v63, %v212_v5  ;;  %v3585_v8 = vadd.f32 %v2975_v6, %v2745_v1 }
 0x319   :  { %v221_v9 = vpop.f32.mrf.mxu0 }
 0x31a   :  { %3306 = vtanh.f32 %v328_v7  ;;  %v3587_v10 = vadd.f32 %v2745_v1, %v221_v9  ;;  %v2756_v18 = vmul.f32 -1.442695, %v328_v7 }
 0x31b   :  { %v2978_v11 = vpop.f32.mrf.mxu0  ;;  %v419_v38 = vpop.f32.mrf.mxu1 }
 0x31c   :  { %v3589_v12 = vadd.f32 %v2978_v11, %v2745_v1  ;;  %3308 = vpow2.f32 %v2756_v18 }
 0x31d   :  { %v231_v13 = vpop.f32.mrf.mxu0  ;;  %v3003_v39 = vpop.f32.mrf.mxu1 }
 0x31e   :  { %v3591_v14 = vadd.f32 %v2745_v1, %v231_v13 }
 0x31f   :  { %v2981_v15 = vpop.f32.mrf.mxu0 }
 0x320   :  { %v3593_v16 = vadd.f32 %v2981_v15, %v2745_v1 }
 0x321   :  { %v3691_v41 = vpop.f32.mrf.mxu0 }
 0x327   :  { %v3307_v17 = vpop.eup %3306 }
 0x328   :  { %338 = vrot.lane.b32.xlu1 %v3307_v17, %s3476_s22 }
 0x329   :  { %v3309_v19 = vpop.eup %3308 }
 0x32a   :  { %v332_v20 = vadd.f32 1.0, %v3309_v19 }
 0x32c   :  { %3310 = vrcp.f32 %v332_v20 }
 0x339   :  { %v3311_v21 = vpop.eup %3310 }
 0x33a   :  { %v336_v24 = vmul.f32 0.0, %v3311_v21 }
 0x39a   :  { %v339_v22 = vpop.permute.xlu1 %338 }
 0x39b   :  { %v341_v23 = vmul.f32 %v3311_v21, %v339_v22 }
 0x39d   :  { %343 = vrot.lane.b32.xlu1 %v341_v23, %s3477_s23 }
 0x40f   :  { %v344_v25 = vpop.permute.xlu1 %343 }
 0x410   :  { %v3597_v26 = vadd.f32 %v344_v25, %v336_v24 }
 0x412   :  { %3312 = vtanh.f32 %v3597_v26 }
 0x41f   :  { %v3313_v35 = vpop.eup %3312 }
 0x420   :  { %349 = vrot.lane.b32.xlu1 %v3313_v35, %s3476_s22 }
 0x492   :  { %v350_v36 = vpop.permute.xlu1 %349 }
 0x493   :  { %v352_v37 = vmul.f32 %v3311_v21, %v350_v36 }
 0x495   :  { %424 = vrot.lane.b32.xlu1 %v352_v37, %s3477_s23 }
 0x507   :  { %v425_v40 = vpop.permute.xlu1 %424 }
 0x508   :  { %3013 = vmatmul.mubr.msk.f32.vlgmr.msra.gmra.mxu0 %vm254_vm3, %v425_v40  ;;  %3024 = vmatmul.mubr.msk.f32.vlgmr.msra.gmra.mxu1 %vm254_vm3, %v425_v40 }
 0x509   :  { %3027 = vmatpush3.msra.mxu0 %v3608_v28  ;;  %3038 = vmatpush3.msra.mxu1 %v3603_v27 }
 0x50a   :  { %3028 = vmatprep.subr.mxu0 %v3474_v45  ;;  %3039 = vmatprep.subr.mxu1 %v3474_v45 }
 0x50b   :  { %3029 = vmatpush3.msra.mxu0 %v3613_v29  ;;  %3034 = vmatprep.mubr.msk.f32.mxu0 %vm3475_vm2, %v3474_v45 }
 0x50c   :  { %3030 = vmatprep.subr.mxu0 %v3474_v45  ;;  %3040 = vmatpush3.msra.mxu1 %v3620_v30 }
 0x50d   :  { %3031 = vmatpush3.msra.mxu0 %v3627_v31  ;;  %3041 = vmatprep.subr.mxu1 %v3474_v45 }
 0x50e   :  { %3032 = vmatprep.subr.mxu0 %v3474_v45  ;;  %3042 = vmatpush3.msra.mxu1 %v3632_v32 }
 0x50f   :  { %3033 = vmatpush3.msra.mxu0 %v3640_v33  ;;  %3043 = vmatprep.subr.mxu1 %v3474_v45 }
 0x510   :  { %3048 = vmatprep.subr.mxu0 %v3474_v45  ;;  %3044 = vmatpush3.msra.mxu1 %v3646_v34 }
 0x511   :  { %3045 = vmatprep.mubr.msk.f32.mxu1 %vm3475_vm2, %v3474_v45  ;;  %3059 = vmatprep.subr.mxu1 %v3474_v45 }
 0x5c8   :  { %v494_v43 = vpop.f32.mrf.mxu0  ;;  %v594_v46 = vpop.f32.mrf.mxu1 }
 0x5c9   :  { %v495_v47 = vadd.f32 %v494_v43, %v419_v38  ;;  %v598_v54 = vadd.f32 %v594_v46, %v3583_v3 }
 0x5ca   :  { %v3014_v48 = vpop.f32.mrf.mxu0  ;;  %v3025_v50 = vpop.f32.mrf.mxu1 }
 0x5cb   :  { %v498_v52 = vadd.f32 %v3696_v42, %v495_v47  ;;  %v2760_v58 = vmul.f32 -1.442695, %v598_v54 }
 0x5cd   :  { %3314 = vtanh.f32 %v498_v52  ;;  %v2758_v57 = vmul.f32 -1.442695, %v498_v52 }
 0x5ce   :  { %3316 = vtanh.f32 %v598_v54 }
 0x5cf   :  { %3318 = vpow2.f32 %v2758_v57 }
 0x5d0   :  { %3320 = vpow2.f32 %v2760_v58 }
 0x5da   :  { %v3315_v55 = vpop.eup %3314 }
 0x5db   :  { %508 = vrot.lane.b32.xlu1 %v3315_v55, %s3476_s22  ;;  %v3317_v56 = vpop.eup %3316 }
 0x5dc   :  { %v3319_v59 = vpop.eup %3318 }
 0x5dd   :  { %v502_v60 = vadd.f32 1.0, %v3319_v59  ;;  %v3321_v61 = vpop.eup %3320 }
 0x5de   :  { %v602_v62 = vadd.f32 1.0, %v3321_v61 }
 0x5df   :  { %608 = vrot.lane.b32.xlu1 %v3317_v56, %s3476_s22  ;;  %3322 = vrcp.f32 %v502_v60 }
 0x5e0   :  { %3324 = vrcp.f32 %v602_v62 }
 0x5ec   :  { %v3323_v63 = vpop.eup %3322 }
 0x5ed   :  { %v3325_v2 = vpop.eup %3324  ;;  %v506_v5 = vmul.f32 0.0, %v3323_v63 }
 0x5ee   :  { %v606_v9 = vmul.f32 %v3325_v2, %v3597_v26 }
 0x64d   :  { %v509_v0 = vpop.permute.xlu1 %508 }
 0x64e   :  { %v511_v1 = vmul.f32 %v3323_v63, %v509_v0 }
 0x650   :  { %513 = vrot.lane.b32.xlu1 %v511_v1, %s3477_s23 }
 0x651   :  { %v609_v3 = vpop.permute.xlu1 %608 }
 0x652   :  { %v611_v4 = vmul.f32 %v3325_v2, %v609_v3 }
 0x654   :  { %613 = vrot.lane.b32.xlu0 %v611_v4, %s3477_s23 }
 0x6c2   :  { %v514_v6 = vpop.permute.xlu1 %513 }
 0x6c3   :  { %v3704_v7 = vadd.f32 %v514_v6, %v506_v5 }
 0x6c5   :  { %3326 = vtanh.f32 %v3704_v7 }
 0x6c6   :  { %v614_v11 = vpop.permute.xlu0 %613 }
 0x6c7   :  { %v3708_v13 = vadd.f32 %v614_v11, %v606_v9 }
 0x6c9   :  { %3328 = vtanh.f32 %v3708_v13 }
 0x6d2   :  { %v3327_v15 = vpop.eup %3326 }
 0x6d3   :  { %519 = vrot.lane.b32.xlu1 %v3327_v15, %s3476_s22 }
 0x6d6   :  { %v3329_v17 = vpop.eup %3328 }
 0x6d7   :  { %619 = vrot.lane.b32.xlu0 %v3329_v17, %s3476_s22 }
 0x745   :  { %v520_v18 = vpop.permute.xlu1 %519 }
 0x746   :  { %v522_v19 = vmul.f32 %v3323_v63, %v520_v18 }
 0x748   :  { %524 = vrot.lane.b32.xlu1 %v522_v19, %s3477_s23 }
 0x749   :  { %v620_v20 = vpop.permute.xlu0 %619 }
 0x74a   :  { %v622_v21 = vmul.f32 %v3325_v2, %v620_v20 }
 0x74c   :  { %696 = vrot.lane.b32.xlu0 %v622_v21, %s3477_s23 }
 0x7ba   :  { %v525_v22 = vpop.permute.xlu1 %524 }
 0x7bb   :  { %527 = vst.msk [vmem:[#allocation2] sm:$0xff] %vm254_vm3, %v525_v22  ;;  %3035 = vmatmul.mubr.msk.f32.vlgmr.msra.gmra.mxu0 %vm254_vm3, %v525_v22 }
 0x7bc   :  { %3049 = vmatpush3.msra.mxu0 %v3535_v44  ;;  %3056 = vmatprep.mubr.msk.f32.mxu0 %vm3475_vm2, %v3474_v45 }
 0x7bd   :  { %3050 = vmatprep.subr.mxu0 %v3474_v45 }
 0x7be   :  { %3051 = vmatpush3.msra.mxu0 %v3543_v49  ;;  %v697_v23 = vpop.permute.xlu0 %696 }
 0x7bf   :  { %3052 = vmatprep.subr.mxu0 %v3474_v45  ;;  %3046 = vmatmul.mubr.msk.f32.vlgmr.msra.gmra.mxu1 %vm254_vm3, %v697_v23 }
 0x7c0   :  { %3053 = vmatpush3.msra.mxu0 %v3553_v51  ;;  %3060 = vmatpush3.msra.mxu1 %v3608_v28 }
 0x7c1   :  { %3054 = vmatprep.subr.mxu0 %v3474_v45  ;;  %3061 = vmatprep.subr.mxu1 %v3474_v45 }
 0x7c2   :  { %3055 = vmatpush3.msra.mxu0 %v3561_v53  ;;  %3062 = vmatpush3.msra.mxu1 %v3613_v29 }
 0x7c3   :  { %3057 = vmatmul.mubr.msk.f32.vlgmr.msra.gmra.mxu0 %vm254_vm3, %v697_v23  ;;  %3070 = vmatprep.subr.mxu0 %v3474_v45 }
 0x7c4   :  { %3071 = vmatpush3.msra.mxu0 %v3603_v27  ;;  %3063 = vmatprep.subr.mxu1 %v3474_v45 }
 0x7c5   :  { %3072 = vmatprep.subr.mxu0 %v3474_v45  ;;  %3064 = vmatpush3.msra.mxu1 %v3627_v31 }
 0x7c6   :  { %3073 = vmatpush3.msra.mxu0 %v3620_v30  ;;  %3065 = vmatprep.subr.mxu1 %v3474_v45 }
 0x7c7   :  { %3074 = vmatprep.subr.mxu0 %v3474_v45  ;;  %3066 = vmatpush3.msra.mxu1 %v3640_v33 }
 0x7c8   :  { %3075 = vmatpush3.msra.mxu0 %v3632_v32  ;;  %3067 = vmatprep.mubr.msk.f32.mxu1 %vm3475_vm2, %v3474_v45 }
 0x7c9   :  { %3076 = vmatprep.subr.mxu0 %v3474_v45  ;;  %3081 = vmatprep.subr.mxu1 %v3474_v45 }
 0x7ca   :  { %3077 = vmatpush3.msra.mxu0 %v3646_v34  ;;  %3078 = vmatprep.mubr.msk.f32.mxu0 %vm3475_vm2, %v3474_v45 }
 0x7cb   :  { %3092 = vmatprep.subr.mxu0 %v3474_v45 }
 0x87b   :  { %v691_v24 = vpop.f32.mrf.mxu0 }
 0x87d   :  { %v3036_v25 = vpop.f32.mrf.mxu0 }
 0x87f   :  { %v766_v26 = vpop.f32.mrf.mxu1 }
 0x880   :  { %v767_v35 = vadd.f32 %v766_v26, %v691_v24 }
 0x881   :  { %v3047_v36 = vpop.f32.mrf.mxu1 }
 0x882   :  { %v770_v37 = vadd.f32 %v3696_v42, %v767_v35 }
 0x883   :  { %v866_v38 = vpop.f32.mrf.mxu0 }
 0x884   :  { %3330 = vtanh.f32 %v770_v37  ;;  %v870_v39 = vadd.f32 %v866_v38, %v3587_v10  ;;  %v2763_v47 = vmul.f32 -1.442695, %v770_v37 }
 0x885   :  { %v3058_v40 = vpop.f32.mrf.mxu0 }
 0x886   :  { %3332 = vtanh.f32 %v870_v39  ;;  %v2765_v48 = vmul.f32 -1.442695, %v870_v39 }
 0x887   :  { %3334 = vpow2.f32 %v2763_v47 }
 0x888   :  { %3336 = vpow2.f32 %v2765_v48 }
 0x891   :  { %v3331_v43 = vpop.eup %3330 }
 0x892   :  { %780 = vrot.lane.b32.xlu1 %v3331_v43, %s3476_s22 }
 0x893   :  { %v3333_v46 = vpop.eup %3332 }
 0x894   :  { %880 = vrot.lane.b32.xlu0 %v3333_v46, %s3476_s22  ;;  %v3335_v50 = vpop.eup %3334 }
 0x895   :  { %v3337_v52 = vpop.eup %3336  ;;  %v774_v54 = vadd.f32 1.0, %v3335_v50 }
 0x896   :  { %v874_v55 = vadd.f32 1.0, %v3337_v52 }
 0x897   :  { %3338 = vrcp.f32 %v774_v54 }
 0x898   :  { %3340 = vrcp.f32 %v874_v55 }
 0x8a4   :  { %v3339_v56 = vpop.eup %3338 }
 0x8a5   :  { %v3341_v58 = vpop.eup %3340  ;;  %v778_v61 = vmul.f32 %v3339_v56, %v3704_v7 }
 0x8a6   :  { %v878_v0 = vmul.f32 %v3341_v58, %v3708_v13 }
 0x904   :  { %v781_v10 = vpop.permute.xlu1 %780 }
 0x905   :  { %v783_v57 = vmul.f32 %v3339_v56, %v781_v10 }
 0x906   :  { %v881_v59 = vpop.permute.xlu0 %880 }
 0x907   :  { %785 = vrot.lane.b32.xlu1 %v783_v57, %s3477_s23  ;;  %v883_v60 = vmul.f32 %v3341_v58, %v881_v59 }
 0x909   :  { %885 = vrot.lane.b32.xlu0 %v883_v60, %s3477_s23 }
 0x979   :  { %v786_v62 = vpop.permute.xlu1 %785 }
 0x97a   :  { %v3756_v63 = vadd.f32 %v786_v62, %v778_v61 }
 0x97b   :  { %v886_v1 = vpop.permute.xlu0 %885 }
 0x97c   :  { %3342 = vtanh.f32 %v3756_v63  ;;  %v3760_v2 = vadd.f32 %v886_v1, %v878_v0 }
 0x97e   :  { %3344 = vtanh.f32 %v3760_v2 }
 0x989   :  { %v3343_v3 = vpop.eup %3342 }
 0x98a   :  { %791 = vrot.lane.b32.xlu1 %v3343_v3, %s3476_s22 }
 0x98b   :  { %v3345_v4 = vpop.eup %3344 }
 0x98c   :  { %891 = vrot.lane.b32.xlu0 %v3345_v4, %s3476_s22 }
 0x9fc   :  { %v792_v5 = vpop.permute.xlu1 %791 }
 0x9fd   :  { %v794_v6 = vmul.f32 %v3339_v56, %v792_v5 }
 0x9fe   :  { %v892_v7 = vpop.permute.xlu0 %891 }
 0x9ff   :  { %796 = vrot.lane.b32.xlu1 %v794_v6, %s3477_s23  ;;  %v894_v9 = vmul.f32 %v3341_v58, %v892_v7 }
 0xa01   :  { %968 = vrot.lane.b32.xlu0 %v894_v9, %s3477_s23 }
 0xa71   :  { %v797_v11 = vpop.permute.xlu1 %796 }
 0xa72   :  { %799 = vst.msk [vmem:[#allocation2 + $0x8] sm:$0xff] %vm254_vm3, %v797_v11  ;;  %3068 = vmatmul.mubr.msk.f32.vlgmr.msra.gmra.mxu1 %vm254_vm3, %v797_v11 }
 0xa73   :  { %3082 = vmatpush3.msra.mxu1 %v3535_v44  ;;  %3089 = vmatprep.mubr.msk.f32.mxu1 %vm3475_vm2, %v3474_v45  ;;  %v969_v13 = vpop.permute.xlu0 %968 }
 0xa74   :  { %3083 = vmatprep.subr.mxu1 %v3474_v45  ;;  %3079 = vmatmul.mubr.msk.f32.vlgmr.msra.gmra.mxu0 %vm254_vm3, %v969_v13 }
 0xa75   :  { %3084 = vmatpush3.msra.mxu1 %v3543_v49  ;;  %3093 = vmatpush3.msra.mxu0 %v3608_v28 }
 0xa76   :  { %3085 = vmatprep.subr.mxu1 %v3474_v45  ;;  %3094 = vmatprep.subr.mxu0 %v3474_v45 }
 0xa77   :  { %3086 = vmatpush3.msra.mxu1 %v3553_v51  ;;  %3095 = vmatpush3.msra.mxu0 %v3613_v29 }
 0xa78   :  { %3087 = vmatprep.subr.mxu1 %v3474_v45  ;;  %3096 = vmatprep.subr.mxu0 %v3474_v45 }
 0xa79   :  { %3088 = vmatpush3.msra.mxu1 %v3561_v53  ;;  %3097 = vmatpush3.msra.mxu0 %v3627_v31 }
 0xa7a   :  { %3090 = vmatmul.mubr.msk.f32.vlgmr.msra.gmra.mxu1 %vm254_vm3, %v969_v13  ;;  %3103 = vmatprep.subr.mxu1 %v3474_v45 }
 0xa7b   :  { %3098 = vmatprep.subr.mxu0 %v3474_v45  ;;  %3104 = vmatpush3.msra.mxu1 %v3603_v27 }
 0xa7c   :  { %3099 = vmatpush3.msra.mxu0 %v3640_v33  ;;  %3105 = vmatprep.subr.mxu1 %v3474_v45 }
 0xa7d   :  { %3100 = vmatprep.mubr.msk.f32.mxu0 %vm3475_vm2, %v3474_v45  ;;  %3106 = vmatpush3.msra.mxu1 %v3620_v30 }
 0xa7e   :  { %3114 = vmatprep.subr.mxu0 %v3474_v45  ;;  %3107 = vmatprep.subr.mxu1 %v3474_v45 }
 0xa7f   :  { %3111 = vmatprep.mubr.msk.f32.mxu1 %vm3475_vm2, %v3474_v45  ;;  %3108 = vmatpush3.msra.mxu1 %v3632_v32 }
 0xa80   :  { %3109 = vmatprep.subr.mxu1 %v3474_v45 }
 0xa81   :  { %3110 = vmatpush3.msra.mxu1 %v3646_v34 }
 0xa82   :  { %3125 = vmatprep.subr.mxu1 %v3474_v45 }
 0xb32   :  { %v963_v15 = vpop.f32.mrf.mxu1 }
 0xb34   :  { %v3069_v17 = vpop.f32.mrf.mxu1  ;;  %v1038_v18 = vpop.f32.mrf.mxu0 }
 0xb35   :  { %v1039_v19 = vadd.f32 %v1038_v18, %v963_v15 }
 0xb36   :  { %v3080_v20 = vpop.f32.mrf.mxu0 }
 0xb37   :  { %v1042_v21 = vadd.f32 %v3696_v42, %v1039_v19 }
 0xb39   :  { %3346 = vtanh.f32 %v1042_v21  ;;  %v2768_v35 = vmul.f32 -1.442695, %v1042_v21 }
 0xb3a   :  { %v1138_v22 = vpop.f32.mrf.mxu1 }
 0xb3b   :  { %v1142_v23 = vadd.f32 %v1138_v22, %v3585_v8 }
 0xb3c   :  { %v3091_v24 = vpop.f32.mrf.mxu1 }
 0xb3d   :  { %3348 = vtanh.f32 %v1142_v23  ;;  %v2770_v36 = vmul.f32 -1.442695, %v1142_v23 }
 0xb3e   :  { %3350 = vpow2.f32 %v2768_v35 }
 0xb3f   :  { %3352 = vpow2.f32 %v2770_v36 }
 0xb46   :  { %v3347_v25 = vpop.eup %3346 }
 0xb47   :  { %1052 = vrot.lane.b32.xlu1 %v3347_v25, %s3476_s22 }
 0xb4a   :  { %v3349_v26 = vpop.eup %3348 }
 0xb4b   :  { %1152 = vrot.lane.b32.xlu0 %v3349_v26, %s3476_s22  ;;  %v3351_v37 = vpop.eup %3350 }
 0xb4c   :  { %v3353_v38 = vpop.eup %3352  ;;  %v1046_v39 = vadd.f32 1.0, %v3351_v37 }
 0xb4d   :  { %v1146_v40 = vadd.f32 1.0, %v3353_v38 }
 0xb4e   :  { %3354 = vrcp.f32 %v1046_v39 }
 0xb4f   :  { %3356 = vrcp.f32 %v1146_v40 }
 0xb5b   :  { %v3355_v43 = vpop.eup %3354 }
 0xb5c   :  { %v3357_v47 = vpop.eup %3356  ;;  %v1050_v52 = vmul.f32 %v3355_v43, %v3756_v63 }
 0xb5d   :  { %v1150_v56 = vmul.f32 %v3357_v47, %v3760_v2 }
 0xbb9   :  { %v1053_v8 = vpop.permute.xlu1 %1052 }
 0xbba   :  { %v1055_v46 = vmul.f32 %v3355_v43, %v1053_v8 }
 0xbbc   :  { %1057 = vrot.lane.b32.xlu1 %v1055_v46, %s3477_s23 }
 0xbbd   :  { %v1153_v48 = vpop.permute.xlu0 %1152 }
 0xbbe   :  { %v1155_v50 = vmul.f32 %v3357_v47, %v1153_v48 }
 0xbc0   :  { %1157 = vrot.lane.b32.xlu0 %v1155_v50, %s3477_s23 }
 0xc2e   :  { %v1058_v54 = vpop.permute.xlu1 %1057 }
 0xc2f   :  { %v3808_v55 = vadd.f32 %v1058_v54, %v1050_v52 }
 0xc31   :  { %3358 = vtanh.f32 %v3808_v55 }
 0xc32   :  { %v1158_v10 = vpop.permute.xlu0 %1157 }
 0xc33   :  { %v3812_v57 = vadd.f32 %v1158_v10, %v1150_v56 }
 0xc35   :  { %3360 = vtanh.f32 %v3812_v57 }
 0xc3e   :  { %v3359_v58 = vpop.eup %3358 }
 0xc3f   :  { %1063 = vrot.lane.b32.xlu1 %v3359_v58, %s3476_s22 }
 0xc42   :  { %v3361_v59 = vpop.eup %3360 }
 0xc43   :  { %1163 = vrot.lane.b32.xlu0 %v3361_v59, %s3476_s22 }
 0xcb1   :  { %v1064_v60 = vpop.permute.xlu1 %1063 }
 0xcb2   :  { %v1066_v61 = vmul.f32 %v3355_v43, %v1064_v60 }
 0xcb4   :  { %1068 = vrot.lane.b32.xlu1 %v1066_v61, %s3477_s23 }
 0xcb5   :  { %v1164_v62 = vpop.permute.xlu0 %1163 }
 0xcb6   :  { %v1166_v63 = vmul.f32 %v3357_v47, %v1164_v62 }
 0xcb8   :  { %1240 = vrot.lane.b32.xlu0 %v1166_v63, %s3477_s23 }
 0xd26   :  { %v1069_v0 = vpop.permute.xlu1 %1068 }
 0xd27   :  { %1071 = vst.msk [vmem:[#allocation2 + $0x10] sm:$0xff] %vm254_vm3, %v1069_v0  ;;  %3101 = vmatmul.mubr.msk.f32.vlgmr.msra.gmra.mxu0 %vm254_vm3, %v1069_v0 }
 0xd28   :  { %3115 = vmatpush3.msra.mxu0 %v3535_v44  ;;  %3122 = vmatprep.mubr.msk.f32.mxu0 %vm3475_vm2, %v3474_v45 }
 0xd29   :  { %3116 = vmatprep.subr.mxu0 %v3474_v45 }
 0xd2a   :  { %v1241_v1 = vpop.permute.xlu0 %1240  ;;  %3117 = vmatpush3.msra.mxu0 %v3543_v49 }
 0xd2b   :  { %3112 = vmatmul.mubr.msk.f32.vlgmr.msra.gmra.mxu1 %vm254_vm3, %v1241_v1  ;;  %3118 = vmatprep.subr.mxu0 %v3474_v45 }
 0xd2c   :  { %3126 = vmatpush3.msra.mxu1 %v3608_v28  ;;  %3119 = vmatpush3.msra.mxu0 %v3553_v51 }
 0xd2d   :  { %3127 = vmatprep.subr.mxu1 %v3474_v45  ;;  %3120 = vmatprep.subr.mxu0 %v3474_v45 }
 0xd2e   :  { %3128 = vmatpush3.msra.mxu1 %v3613_v29  ;;  %3121 = vmatpush3.msra.mxu0 %v3561_v53 }
 0xd2f   :  { %3129 = vmatprep.subr.mxu1 %v3474_v45  ;;  %3123 = vmatmul.mubr.msk.f32.vlgmr.msra.gmra.mxu0 %vm254_vm3, %v1241_v1 }
 0xd30   :  { %3136 = vmatprep.subr.mxu0 %v3474_v45  ;;  %3130 = vmatpush3.msra.mxu1 %v3627_v31 }
 0xd31   :  { %3137 = vmatpush3.msra.mxu0 %v3603_v27  ;;  %3131 = vmatprep.subr.mxu1 %v3474_v45 }
 0xd32   :  { %3138 = vmatprep.subr.mxu0 %v3474_v45  ;;  %3132 = vmatpush3.msra.mxu1 %v3640_v33 }
 0xd33   :  { %3139 = vmatpush3.msra.mxu0 %v3620_v30  ;;  %3133 = vmatprep.mubr.msk.f32.mxu1 %vm3475_vm2, %v3474_v45 }
 0xd34   :  { %3140 = vmatprep.subr.mxu0 %v3474_v45  ;;  %3147 = vmatprep.subr.mxu1 %v3474_v45 }
 0xd35   :  { %3141 = vmatpush3.msra.mxu0 %v3632_v32  ;;  %3144 = vmatprep.mubr.msk.f32.mxu0 %vm3475_vm2, %v3474_v45 }
 0xd36   :  { %3142 = vmatprep.subr.mxu0 %v3474_v45 }
 0xd37   :  { %3143 = vmatpush3.msra.mxu0 %v3646_v34 }
 0xd38   :  { %3158 = vmatprep.subr.mxu0 %v3474_v45 }
 0xde7   :  { %v1235_v2 = vpop.f32.mrf.mxu0 }
 0xde9   :  { %v3102_v3 = vpop.f32.mrf.mxu0 }
 0xdeb   :  { %v1310_v4 = vpop.f32.mrf.mxu1 }
 0xdec   :  { %v1311_v5 = vadd.f32 %v1310_v4, %v1235_v2 }
 0xded   :  { %v3113_v6 = vpop.f32.mrf.mxu1 }
 0xdee   :  { %v1314_v7 = vadd.f32 %v3696_v42, %v1311_v5 }
 0xdef   :  { %v1410_v9 = vpop.f32.mrf.mxu0 }
 0xdf0   :  { %3362 = vtanh.f32 %v1314_v7  ;;  %v1414_v11 = vadd.f32 %v1410_v9, %v3591_v14  ;;  %v2773_v18 = vmul.f32 -1.442695, %v1314_v7 }
 0xdf1   :  { %v3124_v13 = vpop.f32.mrf.mxu0 }
 0xdf2   :  { %3364 = vtanh.f32 %v1414_v11  ;;  %v2775_v19 = vmul.f32 -1.442695, %v1414_v11 }
 0xdf3   :  { %3366 = vpow2.f32 %v2773_v18 }
 0xdf4   :  { %3368 = vpow2.f32 %v2775_v19 }
 0xdfd   :  { %v3363_v15 = vpop.eup %3362 }
 0xdfe   :  { %1324 = vrot.lane.b32.xlu1 %v3363_v15, %s3476_s22 }
 0xdff   :  { %v3365_v17 = vpop.eup %3364 }
 0xe00   :  { %1424 = vrot.lane.b32.xlu0 %v3365_v17, %s3476_s22  ;;  %v3367_v20 = vpop.eup %3366 }
 0xe01   :  { %v3369_v21 = vpop.eup %3368  ;;  %v1318_v22 = vadd.f32 1.0, %v3367_v20 }
 0xe02   :  { %v1418_v23 = vadd.f32 1.0, %v3369_v21 }
 0xe03   :  { %3370 = vrcp.f32 %v1318_v22 }
 0xe04   :  { %3372 = vrcp.f32 %v1418_v23 }
 0xe10   :  { %v3371_v24 = vpop.eup %3370 }
 0xe11   :  { %v3373_v26 = vpop.eup %3372  ;;  %v1322_v37 = vmul.f32 %v3371_v24, %v3808_v55 }
 0xe12   :  { %v1422_v40 = vmul.f32 %v3373_v26, %v3812_v57 }
 0xe70   :  { %v1325_v14 = vpop.permute.xlu1 %1324 }
 0xe71   :  { %v1327_v25 = vmul.f32 %v3371_v24, %v1325_v14 }
 0xe72   :  { %v1425_v35 = vpop.permute.xlu0 %1424 }
 0xe73   :  { %1329 = vrot.lane.b32.xlu1 %v1327_v25, %s3477_s23  ;;  %v1427_v36 = vmul.f32 %v3373_v26, %v1425_v35  ;;  %v3928_v35 = vld [vmem:[%s4172_s2 + $0x18] sm:$0xff] }
 0xe75   :  { %1429 = vrot.lane.b32.xlu0 %v1427_v36, %s3477_s23 }
 0xee5   :  { %v1330_v38 = vpop.permute.xlu1 %1329 }
 0xee6   :  { %v3860_v39 = vadd.f32 %v1330_v38, %v1322_v37  ;;  %v3937_v37 = vld [vmem:[%s4172_s2 + $0x10] sm:$0xff]  ;;  %v3946_v38 = vld [vmem:[%s4172_s2 + $0x8] sm:$0xff] }
 0xee7   :  { %v1430_v43 = vpop.permute.xlu0 %1429 }
 0xee8   :  { %3374 = vtanh.f32 %v3860_v39  ;;  %v3864_v8 = vadd.f32 %v1430_v43, %v1422_v40 }
 0xeea   :  { %3376 = vtanh.f32 %v3864_v8 }
 0xef5   :  { %v3375_v46 = vpop.eup %3374 }
 0xef6   :  { %1335 = vrot.lane.b32.xlu1 %v3375_v46, %s3476_s22 }
 0xef7   :  { %v3377_v47 = vpop.eup %3376 }
 0xef8   :  { %1435 = vrot.lane.b32.xlu0 %v3377_v47, %s3476_s22 }
 0xf68   :  { %v1336_v48 = vpop.permute.xlu1 %1335 }
 0xf69   :  { %v1338_v50 = vmul.f32 %v3371_v24, %v1336_v48 }
 0xf6a   :  { %v1436_v52 = vpop.permute.xlu0 %1435 }
 0xf6b   :  { %1340 = vrot.lane.b32.xlu1 %v1338_v50, %s3477_s23  ;;  %v1438_v54 = vmul.f32 %v3373_v26, %v1436_v52 }
 0xf6d   :  { %1512 = vrot.lane.b32.xlu0 %v1438_v54, %s3477_s23 }
 0xfdd   :  { %v1341_v55 = vpop.permute.xlu1 %1340 }
 0xfde   :  { %1343 = vst.msk [vmem:[#allocation2 + $0x18] sm:$0xff] %vm254_vm3, %v1341_v55  ;;  %3134 = vmatmul.mubr.msk.f32.vlgmr.msra.gmra.mxu1 %vm254_vm3, %v1341_v55 }
 0xfdf   :  { %3148 = vmatpush3.msra.mxu1 %v3535_v44  ;;  %3155 = vmatprep.mubr.msk.f32.mxu1 %vm3475_vm2, %v3474_v45  ;;  %v1513_v56 = vpop.permute.xlu0 %1512 }
 0xfe0   :  { %3149 = vmatprep.subr.mxu1 %v3474_v45  ;;  %3145 = vmatmul.mubr.msk.f32.vlgmr.msra.gmra.mxu0 %vm254_vm3, %v1513_v56 }
 0xfe1   :  { %3150 = vmatpush3.msra.mxu1 %v3543_v49  ;;  %3159 = vmatpush3.msra.mxu0 %v3608_v28 }
 0xfe2   :  { %3151 = vmatprep.subr.mxu1 %v3474_v45  ;;  %3160 = vmatprep.subr.mxu0 %v3474_v45 }
 0xfe3   :  { %3152 = vmatpush3.msra.mxu1 %v3553_v51  ;;  %3161 = vmatpush3.msra.mxu0 %v3613_v29 }
 0xfe4   :  { %3153 = vmatprep.subr.mxu1 %v3474_v45  ;;  %3162 = vmatprep.subr.mxu0 %v3474_v45 }
 0xfe5   :  { %3154 = vmatpush3.msra.mxu1 %v3561_v53  ;;  %3163 = vmatpush3.msra.mxu0 %v3627_v31 }
 0xfe6   :  { %3156 = vmatmul.mubr.msk.f32.vlgmr.msra.gmra.mxu1 %vm254_vm3, %v1513_v56  ;;  %3169 = vmatprep.subr.mxu1 %v3474_v45 }
 0xfe7   :  { %3164 = vmatprep.subr.mxu0 %v3474_v45  ;;  %3170 = vmatpush3.msra.mxu1 %v3603_v27 }
 0xfe8   :  { %3165 = vmatpush3.msra.mxu0 %v3640_v33  ;;  %3171 = vmatprep.subr.mxu1 %v3474_v45 }
 0xfe9   :  { %3166 = vmatprep.mubr.msk.f32.mxu0 %vm3475_vm2, %v3474_v45  ;;  %3172 = vmatpush3.msra.mxu1 %v3620_v30 }
 0xfea   :  { %3180 = vmatprep.subr.mxu0 %v3474_v45  ;;  %3173 = vmatprep.subr.mxu1 %v3474_v45 }
 0xfeb   :  { %3177 = vmatprep.mubr.msk.f32.mxu1 %vm3475_vm2, %v3474_v45  ;;  %3174 = vmatpush3.msra.mxu1 %v3632_v32 }
 0xfec   :  { %3175 = vmatprep.subr.mxu1 %v3474_v45 }
 0xfed   :  { %3176 = vmatpush3.msra.mxu1 %v3646_v34 }
 0xfee   :  { %3191 = vmatprep.subr.mxu1 %v3474_v45 }
0x109e   :  { %v1507_v44 = vpop.f32.mrf.mxu1 }
0x10a0   :  { %v3135_v49 = vpop.f32.mrf.mxu1  ;;  %v1582_v51 = vpop.f32.mrf.mxu0 }
0x10a1   :  { %v1583_v53 = vadd.f32 %v1582_v51, %v1507_v44 }
0x10a2   :  { %v3146_v10 = vpop.f32.mrf.mxu0 }
0x10a3   :  { %v1586_v57 = vadd.f32 %v3696_v42, %v1583_v53 }
0x10a5   :  { %3378 = vtanh.f32 %v1586_v57  ;;  %v2778_v63 = vmul.f32 -1.442695, %v1586_v57 }
0x10a6   :  { %v1682_v58 = vpop.f32.mrf.mxu1 }
0x10a7   :  { %v1686_v59 = vadd.f32 %v1682_v58, %v3589_v12 }
0x10a8   :  { %v3157_v60 = vpop.f32.mrf.mxu1 }
0x10a9   :  { %3380 = vtanh.f32 %v1686_v59  ;;  %v2780_v0 = vmul.f32 -1.442695, %v1686_v59 }
0x10aa   :  { %3382 = vpow2.f32 %v2778_v63 }
0x10ab   :  { %3384 = vpow2.f32 %v2780_v0 }
0x10b2   :  { %v3379_v61 = vpop.eup %3378 }
0x10b3   :  { %1596 = vrot.lane.b32.xlu1 %v3379_v61, %s3476_s22 }
0x10b6   :  { %v3381_v62 = vpop.eup %3380 }
0x10b7   :  { %1696 = vrot.lane.b32.xlu0 %v3381_v62, %s3476_s22  ;;  %v3383_v1 = vpop.eup %3382 }
0x10b8   :  { %v3385_v2 = vpop.eup %3384  ;;  %v1590_v3 = vadd.f32 1.0, %v3383_v1 }
0x10b9   :  { %v1690_v4 = vadd.f32 1.0, %v3385_v2 }
0x10ba   :  { %3386 = vrcp.f32 %v1590_v3 }
0x10bb   :  { %3388 = vrcp.f32 %v1690_v4 }
0x10c7   :  { %v3387_v5 = vpop.eup %3386 }
0x10c8   :  { %v3389_v7 = vpop.eup %3388  ;;  %v1594_v13 = vmul.f32 %v3387_v5, %v3860_v39  ;;  %v3955_v39 = vld [vmem:[%s4172_s2] sm:$0xff] }
0x10c9   :  { %v1694_v18 = vmul.f32 %v3389_v7, %v3864_v8 }
0x1125   :  { %v1597_v12 = vpop.permute.xlu1 %1596 }
0x1126   :  { %v1599_v6 = vmul.f32 %v3387_v5, %v1597_v12 }
0x1128   :  { %1601 = vrot.lane.b32.xlu1 %v1599_v6, %s3477_s23  ;;  %v3439_v6 = vld [vmem:[%s4172_s2 + $0x58] sm:$0xff] }
0x1129   :  { %v1697_v9 = vpop.permute.xlu0 %1696 }
0x112a   :  { %v1699_v11 = vmul.f32 %v3389_v7, %v1697_v9  ;;  %v3441_v9 = vld [vmem:[%s4172_s2 + $0x48] sm:$0xff] }
0x112c   :  { %1701 = vrot.lane.b32.xlu0 %v1699_v11, %s3477_s23  ;;  %v3442_v11 = vld [vmem:[%s4172_s2 + $0x38] sm:$0xff] }
0x119a   :  { %v1602_v15 = vpop.permute.xlu1 %1601 }
0x119b   :  { %v3912_v17 = vadd.f32 %v1602_v15, %v1594_v13  ;;  %v3443_v13 = vld [vmem:[%s4172_s2 + $0x40] sm:$0xff]  ;;  %v3444_v15 = vld [vmem:[%s4172_s2 + $0x30] sm:$0xff] }
0x119d   :  { %3390 = vtanh.f32 %v3912_v17 }
0x119e   :  { %v1702_v19 = vpop.permute.xlu0 %1701 }
0x119f   :  { %v3916_v20 = vadd.f32 %v1702_v19, %v1694_v18  ;;  %v3446_v18 = vld [vmem:[%s4172_s2 + $0x20] sm:$0xff] }
0x11a1   :  { %3392 = vtanh.f32 %v3916_v20 }
0x11aa   :  { %v3391_v21 = vpop.eup %3390 }
0x11ab   :  { %1607 = vrot.lane.b32.xlu1 %v3391_v21, %s3476_s22 }
0x11ae   :  { %v3393_v22 = vpop.eup %3392 }
0x11af   :  { %1707 = vrot.lane.b32.xlu0 %v3393_v22, %s3476_s22 }
0x121d   :  { %v1608_v23 = vpop.permute.xlu1 %1607 }
0x121e   :  { %v1610_v24 = vmul.f32 %v3387_v5, %v1608_v23 }
0x1220   :  { %1612 = vrot.lane.b32.xlu1 %v1610_v24, %s3477_s23 }
0x1221   :  { %v1708_v14 = vpop.permute.xlu0 %1707 }
0x1222   :  { %v1710_v25 = vmul.f32 %v3389_v7, %v1708_v14  ;;  %v3440_v7 = vld [vmem:[%s4172_s2 + $0x50] sm:$0xff] }
0x1224   :  { %1784 = vrot.lane.b32.xlu0 %v1710_v25, %s3477_s23 }
0x1292   :  { %v1613_v26 = vpop.permute.xlu1 %1612 }
0x1293   :  { %1615 = vst.msk [vmem:[#allocation2 + $0x20] sm:$0xff] %vm254_vm3, %v1613_v26  ;;  %3167 = vmatmul.mubr.msk.f32.vlgmr.msra.gmra.mxu0 %vm254_vm3, %v1613_v26 }
0x1294   :  { %3181 = vmatpush3.msra.mxu0 %v3928_v35  ;;  %3188 = vmatprep.mubr.msk.f32.mxu0 %vm3475_vm2, %v3474_v45 }
0x1295   :  { %3182 = vmatprep.subr.mxu0 %v3474_v45 }
0x1296   :  { %v1785_v36 = vpop.permute.xlu0 %1784  ;;  %3183 = vmatpush3.msra.mxu0 %v3937_v37 }
0x1297   :  { %3178 = vmatmul.mubr.msk.f32.vlgmr.msra.gmra.mxu1 %vm254_vm3, %v1785_v36  ;;  %3184 = vmatprep.subr.mxu0 %v3474_v45 }
0x1298   :  { %3192 = vmatpush3.msra.mxu1 %v3608_v28  ;;  %3185 = vmatpush3.msra.mxu0 %v3946_v38 }
0x1299   :  { %3193 = vmatprep.subr.mxu1 %v3474_v45  ;;  %3186 = vmatprep.subr.mxu0 %v3474_v45 }
0x129a   :  { %3194 = vmatpush3.msra.mxu1 %v3613_v29  ;;  %3187 = vmatpush3.msra.mxu0 %v3955_v39 }
0x129b   :  { %3195 = vmatprep.subr.mxu1 %v3474_v45  ;;  %3189 = vmatmul.mubr.msk.f32.vlgmr.msra.gmra.mxu0 %vm254_vm3, %v1785_v36 }
0x129c   :  { %3202 = vmatprep.subr.mxu0 %v3474_v45  ;;  %3196 = vmatpush3.msra.mxu1 %v3627_v31 }
0x129d   :  { %3203 = vmatpush3.msra.mxu0 %v3603_v27  ;;  %3197 = vmatprep.subr.mxu1 %v3474_v45 }
0x129e   :  { %3204 = vmatprep.subr.mxu0 %v3474_v45  ;;  %3198 = vmatpush3.msra.mxu1 %v3640_v33 }
0x129f   :  { %3205 = vmatpush3.msra.mxu0 %v3620_v30  ;;  %3199 = vmatprep.mubr.msk.f32.mxu1 %vm3475_vm2, %v3474_v45 }
0x12a0   :  { %3206 = vmatprep.subr.mxu0 %v3474_v45  ;;  %3213 = vmatprep.subr.mxu1 %v3474_v45 }
0x12a1   :  { %3207 = vmatpush3.msra.mxu0 %v3632_v32  ;;  %3210 = vmatprep.mubr.msk.f32.mxu0 %vm3475_vm2, %v3474_v45  ;;  %v3438_v32 = vld [vmem:[%s4172_s2 + $0x68] ss:$0 sm:$0xff] }
0x12a2   :  { %3208 = vmatprep.subr.mxu0 %v3474_v45  ;;  %v242_v40 = vadd.f32 %v3438_v32, %v3691_v41 }
0x12a3   :  { %3209 = vmatpush3.msra.mxu0 %v3646_v34 }
0x12a4   :  { %3224 = vmatprep.subr.mxu0 %v3474_v45 }
0x1353   :  { %v1779_v27 = vpop.f32.mrf.mxu0 }
0x1355   :  { %v3168_v28 = vpop.f32.mrf.mxu0 }
0x1357   :  { %v1854_v29 = vpop.f32.mrf.mxu1 }
0x1358   :  { %v1855_v30 = vadd.f32 %v1854_v29, %v1779_v27 }
0x1359   :  { %v3179_v31 = vpop.f32.mrf.mxu1 }
0x135a   :  { %v1858_v33 = vadd.f32 %v3696_v42, %v1855_v30 }
0x135b   :  { %v1954_v43 = vpop.f32.mrf.mxu0 }
0x135c   :  { %3394 = vtanh.f32 %v1858_v33  ;;  %v1958_v8 = vadd.f32 %v1954_v43, %v242_v40  ;;  %v2783_v48 = vmul.f32 -1.442695, %v1858_v33 }
0x135d   :  { %v3190_v46 = vpop.f32.mrf.mxu0 }
0x135e   :  { %3396 = vtanh.f32 %v1958_v8  ;;  %v2785_v50 = vmul.f32 -1.442695, %v1958_v8 }
0x135f   :  { %3398 = vpow2.f32 %v2783_v48 }
0x1360   :  { %3400 = vpow2.f32 %v2785_v50 }
0x1369   :  { %v3395_v34 = vpop.eup %3394 }
0x136a   :  { %1868 = vrot.lane.b32.xlu1 %v3395_v34, %s3476_s22 }
0x136b   :  { %v3397_v47 = vpop.eup %3396 }
0x136c   :  { %1968 = vrot.lane.b32.xlu0 %v3397_v47, %s3476_s22  ;;  %v3399_v52 = vpop.eup %3398  ;;  %v2459_v47 = vld [vmem:[%s4173_s3 + $0x58] sm:$0xff] }
0x136d   :  { %v3401_v54 = vpop.eup %3400  ;;  %v1862_v55 = vadd.f32 1.0, %v3399_v52  ;;  %v2443_v52 = vld [vmem:[%s4173_s3 + $0x18] sm:$0xff] }
0x136e   :  { %v1962_v56 = vadd.f32 1.0, %v3401_v54 }
0x136f   :  { %3402 = vrcp.f32 %v1862_v55 }
0x1370   :  { %3404 = vrcp.f32 %v1962_v56 }
0x137c   :  { %v3403_v41 = vpop.eup %3402 }
0x137d   :  { %v3405_v51 = vpop.eup %3404  ;;  %v1866_v57 = vmul.f32 %v3403_v41, %v3912_v17  ;;  %v3445_v17 = vld [vmem:[%s4172_s2 + $0x28] sm:$0xff] }
0x137e   :  { %v1966_v60 = vmul.f32 %v3405_v51, %v3916_v20 }
0x13dc   :  { %v1869_v44 = vpop.permute.xlu1 %1868 }
0x13dd   :  { %v1871_v49 = vmul.f32 %v3403_v41, %v1869_v44  ;;  %v2444_v44 = vld [vmem:[#allocation3] sm:$0xff] }
0x13de   :  { %v1969_v53 = vpop.permute.xlu0 %1968 }
0x13df   :  { %1873 = vrot.lane.b32.xlu1 %v1871_v49, %s3477_s23  ;;  %v1971_v10 = vmul.f32 %v3405_v51, %v1969_v53  ;;  %v2457_v53 = vld [vmem:[%s4173_s3 + $0x48] sm:$0xff] }
0x13e1   :  { %1973 = vrot.lane.b32.xlu0 %v1971_v10, %s3477_s23 }
0x1451   :  { %v1874_v58 = vpop.permute.xlu1 %1873 }
0x1452   :  { %v3987_v59 = vadd.f32 %v1874_v58, %v1866_v57  ;;  %v2442_v57 = vld [vmem:[%s4173_s3 + $0x10] sm:$0xff]  ;;  %v2456_v58 = vld [vmem:[%s4173_s3 + $0x40] sm:$0xff] }
0x1453   :  { %v1974_v61 = vpop.permute.xlu0 %1973 }
0x1454   :  { %3406 = vtanh.f32 %v3987_v59  ;;  %v3991_v62 = vadd.f32 %v1974_v61, %v1966_v60  ;;  %v2455_v60 = vld [vmem:[%s4173_s3 + $0x38] sm:$0xff]  ;;  %v2441_v61 = vld [vmem:[%s4173_s3 + $0x8] sm:$0xff] }
0x1456   :  { %3408 = vtanh.f32 %v3991_v62 }
0x1461   :  { %v3407_v63 = vpop.eup %3406 }
0x1462   :  { %1879 = vrot.lane.b32.xlu1 %v3407_v63, %s3476_s22  ;;  %v2440_v63 = vld [vmem:[%s4173_s3] sm:$0xff] }
0x1463   :  { %v3409_v0 = vpop.eup %3408 }
0x1464   :  { %1979 = vrot.lane.b32.xlu0 %v3409_v0, %s3476_s22  ;;  %v2453_v0 = vld [vmem:[%s4173_s3 + $0x28] sm:$0xff] }
0x14d4   :  { %v1880_v1 = vpop.permute.xlu1 %1879 }
0x14d5   :  { %v1882_v2 = vmul.f32 %v3403_v41, %v1880_v1  ;;  %v2433_v1 = vld [vmem:[#allocation2 + $0x8] sm:$0xff] }
0x14d6   :  { %v1980_v3 = vpop.permute.xlu0 %1979 }
0x14d7   :  { %1884 = vrot.lane.b32.xlu1 %v1882_v2, %s3477_s23  ;;  %v1982_v4 = vmul.f32 %v3405_v51, %v1980_v3  ;;  %v2458_v51 = vld [vmem:[%s4173_s3 + $0x50] sm:$0xff]  ;;  %v2452_v2 = vld [vmem:[%s4173_s3 + $0x20] sm:$0xff] }
0x14d8   :  { %v2434_v3 = vld [vmem:[#allocation2 + $0x10] sm:$0xff] }
0x14d9   :  { %2056 = vrot.lane.b32.xlu0 %v1982_v4, %s3477_s23  ;;  %v2445_v4 = vld [vmem:[#allocation3 + $0x8] sm:$0xff] }
0x1549   :  { %v1885_v5 = vpop.permute.xlu1 %1884 }
0x154a   :  { %1887 = vst.msk [vmem:[#allocation2 + $0x28] sm:$0xff] %vm254_vm3, %v1885_v5  ;;  %3200 = vmatmul.mubr.msk.f32.vlgmr.msra.gmra.mxu1 %vm254_vm3, %v1885_v5  ;;  %v2446_v5 = vld [vmem:[#allocation3 + $0x10] sm:$0xff] }
0x154b   :  { %3214 = vmatpush3.msra.mxu1 %v3928_v35  ;;  %3221 = vmatprep.mubr.msk.f32.mxu1 %vm3475_vm2, %v3474_v45  ;;  %v2057_v12 = vpop.permute.xlu0 %2056 }
0x154c   :  { %3215 = vmatprep.subr.mxu1 %v3474_v45  ;;  %3211 = vmatmul.mubr.msk.f32.vlgmr.msra.gmra.mxu0 %vm254_vm3, %v2057_v12 }
0x154d   :  { %3216 = vmatpush3.msra.mxu1 %v3937_v37  ;;  %3225 = vmatpush3.msra.mxu0 %v3439_v6  ;;  %v2436_v6 = vld [vmem:[#allocation2 + $0x20] sm:$0xff] }
0x154e   :  { %3217 = vmatprep.subr.mxu1 %v3474_v45  ;;  %3226 = vmatprep.subr.mxu0 %v3474_v45 }
0x154f   :  { %3218 = vmatpush3.msra.mxu1 %v3946_v38  ;;  %3227 = vmatpush3.msra.mxu0 %v3440_v7  ;;  %v2447_v7 = vld [vmem:[#allocation3 + $0x18] sm:$0xff] }
0x1550   :  { %3219 = vmatprep.subr.mxu1 %v3474_v45  ;;  %3228 = vmatprep.subr.mxu0 %v3474_v45 }
0x1551   :  { %3220 = vmatpush3.msra.mxu1 %v3955_v39  ;;  %3229 = vmatpush3.msra.mxu0 %v3441_v9  ;;  %v2448_v9 = vld [vmem:[#allocation3 + $0x20] sm:$0xff] }
0x1552   :  { %3222 = vmatmul.mubr.msk.f32.vlgmr.msra.gmra.mxu1 %vm254_vm3, %v2057_v12  ;;  %3235 = vmatprep.subr.mxu1 %v3474_v45  ;;  %v2435_v12 = vld [vmem:[#allocation2 + $0x18] sm:$0xff] }
0x1553   :  { %3236 = vmatpush3.msra.mxu1 %v3442_v11  ;;  %3230 = vmatprep.subr.mxu0 %v3474_v45  ;;  %v2437_v11 = vld [vmem:[#allocation2 + $0x28] sm:$0xff] }
0x1554   :  { %3237 = vmatprep.subr.mxu1 %v3474_v45  ;;  %3231 = vmatpush3.msra.mxu0 %v3443_v13 }
0x1555   :  { %3238 = vmatpush3.msra.mxu1 %v3444_v15  ;;  %3232 = vmatprep.mubr.msk.f32.mxu0 %vm3475_vm2, %v3474_v45  ;;  %v2449_v15 = vld [vmem:[#allocation3 + $0x28] sm:$0xff] }
0x1556   :  { %3239 = vmatprep.subr.mxu1 %v3474_v45  ;;  %3243 = vmatprep.mubr.msk.f32.mxu1 %vm3475_vm2, %v3474_v45 }
0x1557   :  { %3240 = vmatpush3.msra.mxu1 %v3445_v17  ;;  %3246 = vmatprep.subr.mxu0 %v2459_v47 }
0x1558   :  { %3241 = vmatprep.subr.mxu1 %v3474_v45 }
0x1559   :  { %3242 = vmatpush3.msra.mxu1 %v3446_v18 }
0x155a   :  { %3274 = vmatprep.subr.mxu1 %v2443_v52 }
0x160a   :  { %v2051_v19 = vpop.f32.mrf.mxu1 }
0x160c   :  { %v3201_v20 = vpop.f32.mrf.mxu1  ;;  %v2126_v21 = vpop.f32.mrf.mxu0 }
0x160d   :  { %v2127_v22 = vadd.f32 %v2126_v21, %v2051_v19 }
0x160e   :  { %v3212_v23 = vpop.f32.mrf.mxu0 }
0x160f   :  { %v2130_v24 = vadd.f32 %v3696_v42, %v2127_v22  ;;  %v3447_v22 = vld [vmem:[%s4172_s2 + $0x70] ss:$0 sm:$0xff] }
0x1611   :  { %3410 = vtanh.f32 %v2130_v24  ;;  %v2788_v36 = vmul.f32 -1.442695, %v2130_v24 }
0x1612   :  { %v2226_v14 = vpop.f32.mrf.mxu1 }
0x1613   :  { %v2230_v25 = vadd.f32 %v2226_v14, %v3593_v16 }
0x1614   :  { %v3223_v26 = vpop.f32.mrf.mxu1 }
0x1615   :  { %3412 = vtanh.f32 %v2230_v25  ;;  %v2790_v37 = vmul.f32 -1.442695, %v2230_v25  ;;  %v4119_v26 = vld [vmem:[%s4173_s3 + $0x60] ss:$0 sm:$0xff] }
0x1616   :  { %3414 = vpow2.f32 %v2788_v36 }
0x1617   :  { %3416 = vpow2.f32 %v2790_v37 }
0x161e   :  { %v3411_v35 = vpop.eup %3410 }
0x161f   :  { %2140 = vrot.lane.b32.xlu1 %v3411_v35, %s3476_s22 }
0x1622   :  { %v3413_v45 = vpop.eup %3412 }
0x1623   :  { %2240 = vrot.lane.b32.xlu0 %v3413_v45, %s3476_s22  ;;  %v3415_v38 = vpop.eup %3414 }
0x1624   :  { %v3417_v39 = vpop.eup %3416  ;;  %v2134_v27 = vadd.f32 1.0, %v3415_v38 }
0x1625   :  { %v2234_v42 = vadd.f32 1.0, %v3417_v39 }
0x1626   :  { %3418 = vrcp.f32 %v2134_v27 }
0x1627   :  { %3420 = vrcp.f32 %v2234_v42 }
0x1633   :  { %v3419_v28 = vpop.eup %3418 }
0x1634   :  { %v3421_v30 = vpop.eup %3420  ;;  %v2138_v32 = vmul.f32 %v3419_v28, %v3987_v59  ;;  %v2432_v59 = vld [vmem:[#allocation2] sm:$0xff] }
0x1635   :  { %v2238_v8 = vmul.f32 %v3421_v30, %v3991_v62  ;;  %v2454_v62 = vld [vmem:[%s4173_s3 + $0x30] sm:$0xff] }
0x1691   :  { %v2141_v16 = vpop.permute.xlu1 %2140 }
0x1692   :  { %v2143_v29 = vmul.f32 %v3419_v28, %v2141_v16 }
0x1694   :  { %2145 = vrot.lane.b32.xlu1 %v2143_v29, %s3477_s23 }
0x1695   :  { %v2241_v31 = vpop.permute.xlu0 %2240 }
0x1696   :  { %v2243_v33 = vmul.f32 %v3421_v30, %v2241_v31 }
0x1698   :  { %2245 = vrot.lane.b32.xlu0 %v2243_v33, %s3477_s23 }
0x1706   :  { %v2146_v40 = vpop.permute.xlu1 %2145 }
0x1707   :  { %v4053_v43 = vadd.f32 %v2146_v40, %v2138_v32 }
0x1709   :  { %3422 = vtanh.f32 %v4053_v43 }
0x170a   :  { %v2246_v46 = vpop.permute.xlu0 %2245 }
0x170b   :  { %v2248_v34 = vadd.f32 %v2246_v46, %v2238_v8 }
0x170d   :  { %3424 = vtanh.f32 %v2248_v34 }
0x1716   :  { %v3423_v48 = vpop.eup %3422 }
0x1717   :  { %2151 = vrot.lane.b32.xlu1 %v3423_v48, %s3476_s22 }
0x171a   :  { %v3425_v50 = vpop.eup %3424 }
0x171b   :  { %2251 = vrot.lane.b32.xlu0 %v3425_v50, %s3476_s22 }
0x1789   :  { %v2152_v54 = vpop.permute.xlu1 %2151 }
0x178a   :  { %v2154_v55 = vmul.f32 %v3419_v28, %v2152_v54 }
0x178c   :  { %2156 = vrot.lane.b32.xlu1 %v2154_v55, %s3477_s23 }
0x178d   :  { %v2252_v56 = vpop.permute.xlu0 %2251 }
0x178e   :  { %v2254_v41 = vmul.f32 %v3421_v30, %v2252_v56 }
0x1790   :  { %2328 = vrot.lane.b32.xlu0 %v2254_v41, %s3477_s23 }
0x17fe   :  { %v2157_v49 = vpop.permute.xlu1 %2156 }
0x17ff   :  { %2159 = vst.msk [vmem:[#allocation2 + $0x30] sm:$0xff] %vm254_vm3, %v2157_v49  ;;  %3233 = vmatmul.mubr.msk.f32.vlgmr.msra.gmra.mxu0 %vm254_vm3, %v2157_v49 }
0x1800   :  { %3247 = vmatpush3.msra.mxu0 %v2459_v47  ;;  %3262 = vmatprep.mubr.msk.f32.mxu0 %vm2460_vm4, %v2444_v44 }
0x1801   :  { %3248 = vmatprep.subr.mxu0 %v2458_v51 }
0x1802   :  { %v2329_v10 = vpop.permute.xlu0 %2328  ;;  %3249 = vmatpush3.msra.mxu0 %v2458_v51 }
0x1803   :  { %3244 = vmatmul.mubr.msk.f32.vlgmr.msra.gmra.mxu1 %vm254_vm3, %v2329_v10  ;;  %3250 = vmatprep.subr.mxu0 %v2457_v53 }
0x1804   :  { %3275 = vmatpush3.msra.mxu1 %v2443_v52  ;;  %3251 = vmatpush3.msra.mxu0 %v2457_v53 }
0x1805   :  { %3276 = vmatprep.subr.mxu1 %v2442_v57  ;;  %3252 = vmatprep.subr.mxu0 %v2456_v58 }
0x1806   :  { %3282 = vmatprep.mubr.msk.f32.mxu1 %vm254_vm3, %v2432_v59  ;;  %3253 = vmatpush3.msra.mxu0 %v2456_v58  ;;  %v2438_v13 = vld [vmem:[#allocation2 + $0x30] sm:$0xff]  ;;  %v2451_v58 = vld [vmem:[#allocation3 + $0x38] sm:$0xff] }
0x1807   :  { %3277 = vmatpush3.msra.mxu1 %v2442_v57  ;;  %3254 = vmatprep.subr.mxu0 %v2455_v60  ;;  %v2450_v57 = vld [vmem:[#allocation3 + $0x30] sm:$0xff] }
0x1808   :  { %3278 = vmatprep.subr.mxu1 %v2441_v61  ;;  %3255 = vmatpush3.msra.mxu0 %v2455_v60 }
0x1809   :  { %3279 = vmatpush3.msra.mxu1 %v2441_v61  ;;  %3256 = vmatprep.subr.mxu0 %v2454_v62 }
0x180a   :  { %3280 = vmatprep.subr.mxu1 %v2440_v63  ;;  %3257 = vmatpush3.msra.mxu0 %v2454_v62 }
0x180b   :  { %3281 = vmatpush3.msra.mxu1 %v2440_v63  ;;  %3258 = vmatprep.subr.mxu0 %v2453_v0 }
0x180c   :  { %3283 = vmatmul.mubr.msk.f32.vlgmr.msra.gmra.mxu1 %vm254_vm3, %v2433_v1  ;;  %3259 = vmatpush3.msra.mxu0 %v2453_v0 }
0x180d   :  { %3285 = vmatprep.mubr.msk.f32.mxu1 %vm254_vm3, %v2434_v3  ;;  %3260 = vmatprep.subr.mxu0 %v2452_v2 }
0x180e   :  { %3261 = vmatpush3.msra.mxu0 %v2452_v2 }
0x180f   :  { %3263 = vmatmul.mubr.msk.f32.vlgmr.msra.gmra.mxu0 %vm2460_vm4, %v2445_v4 }
0x1810   :  { %3286 = vmatmul.mubr.msk.f32.gmra.mxu1 %vm254_vm3, %v2435_v12  ;;  %3265 = vmatprep.mubr.msk.f32.mxu0 %vm2460_vm4, %v2446_v5 }
0x1811   :  { %3288 = vmatprep.mubr.msk.f32.mxu1 %vm254_vm3, %v2436_v6 }
0x1813   :  { %3266 = vmatmul.mubr.msk.f32.gmra.mxu0 %vm2460_vm4, %v2447_v7 }
0x1814   :  { %3289 = vmatmul.mubr.msk.f32.gmra.mxu1 %vm254_vm3, %v2437_v11  ;;  %3268 = vmatprep.mubr.msk.f32.mxu0 %vm2460_vm4, %v2448_v9 }
0x1815   :  { %3291 = vmatprep.mubr.msk.f32.mxu1 %vm254_vm3, %v2438_v13 }
0x1817   :  { %3269 = vmatmul.mubr.msk.f32.gmra.mxu0 %vm2460_vm4, %v2449_v15 }
0x1818   :  { %3271 = vmatprep.mubr.msk.f32.mxu0 %vm2460_vm4, %v2450_v57 }
0x181b   :  { %3272 = vmatmul.mubr.msk.f32.gmra.mxu0 %vm2460_vm4, %v2451_v58 }
0x18bf   :  { %v2323_v17 = vpop.f32.mrf.mxu0 }
0x18c1   :  { %v3234_v18 = vpop.f32.mrf.mxu0 }
0x18c3   :  { %v2398_v19 = vpop.f32.mrf.mxu1 }
0x18c4   :  { %v2399_v20 = vadd.f32 %v2398_v19, %v2323_v17 }
0x18c5   :  { %v3245_v21 = vpop.f32.mrf.mxu1 }
0x18c6   :  { %v2402_v23 = vadd.f32 %v3447_v22, %v2399_v20 }
0x18c8   :  { %3426 = vtanh.f32 %v2402_v23  ;;  %v2793_v52 = vmul.f32 -1.442695, %v2402_v23 }
0x18ca   :  { %3428 = vpow2.f32 %v2793_v52 }
0x18cc   :  { %v3284_v24 = vpop.f32.mrf.mxu1 }
0x18ce   :  { %v2680_v14 = vpop.f32.mrf.mxu1 }
0x18cf   :  { %v3264_v25 = vpop.f32.mrf.mxu0 }
0x18d0   :  { %v3287_v35 = vpop.f32.mrf.mxu1  ;;  %v2686_v45 = vadd.f32 %v3284_v24, %v3264_v25 }
0x18d1   :  { %v2551_v36 = vpop.f32.mrf.mxu0 }
0x18d2   :  { %v2690_v37 = vpop.f32.mrf.mxu1  ;;  %v2725_v38 = vadd.f32 %v4119_v26, %v2686_v45  ;;  %v2681_v39 = vadd.f32 %v2680_v14, %v2551_v36 }
0x18d3   :  { %v3267_v27 = vpop.f32.mrf.mxu0 }
0x18d4   :  { %2733 = vst.msk [vmem:[%s4174_s4 + $0x8] sm:$0xff] %vm61_vm0, %v2725_v38  ;;  %v2724_v28 = vadd.f32 %v4119_v26, %v2681_v39  ;;  %v2696_v16 = vadd.f32 %v3287_v35, %v3267_v27  ;;  %v3290_v29 = vpop.f32.mrf.mxu1 }
0x18d5   :  { %v3427_v42 = vpop.eup %3426  ;;  %v2561_v30 = vpop.f32.mrf.mxu0 }
0x18d6   :  { %2412 = vrot.lane.b32.xlu1 %v3427_v42, %s3476_s22  ;;  %2732 = vst.msk [vmem:[%s4174_s4] sm:$0xff] %vm61_vm0, %v2724_v28  ;;  %v2727_v31 = vadd.f32 %v4119_v26, %v2696_v16  ;;  %v2691_v33 = vadd.f32 %v2690_v37, %v2561_v30  ;;  %v2700_v46 = vpop.f32.mrf.mxu1 }
0x18d7   :  { %v3270_v32 = vpop.f32.mrf.mxu0  ;;  %v3429_v54 = vpop.eup %3428 }
0x18d8   :  { %2735 = vst.msk [vmem:[%s4174_s4 + $0x18] sm:$0xff] %vm61_vm0, %v2727_v31  ;;  %v2726_v40 = vadd.f32 %v4119_v26, %v2691_v33  ;;  %v2706_v8 = vadd.f32 %v3290_v29, %v3270_v32  ;;  %v2406_v55 = vadd.f32 1.0, %v3429_v54 }
0x18d9   :  { %v2571_v34 = vpop.f32.mrf.mxu0 }
0x18da   :  { %2734 = vst.msk [vmem:[%s4174_s4 + $0x10] sm:$0xff] %vm61_vm0, %v2726_v40  ;;  %v2729_v47 = vadd.f32 %v4119_v26, %v2706_v8  ;;  %v2701_v48 = vadd.f32 %v2700_v46, %v2571_v34  ;;  %3430 = vrcp.f32 %v2406_v55 }
0x18db   :  { %v3273_v62 = vpop.f32.mrf.mxu0 }
0x18dc   :  { %2737 = vst.msk [vmem:[%s4174_s4 + $0x28] sm:$0xff] %vm61_vm0, %v2729_v47  ;;  %v2728_v50 = vadd.f32 %v4119_v26, %v2701_v48 }
0x18dd   :  { %v2581_v1 = vpop.f32.mrf.mxu0 }
0x18de   :  { %2736 = vst.msk [vmem:[%s4174_s4 + $0x20] sm:$0xff] %vm61_vm0, %v2728_v50 }
0x18e7   :  { %v3431_v56 = vpop.eup %3430 }
0x18e8   :  { %v2410_v49 = vmul.f32 %v3431_v56, %v4053_v43 }
0x1948   :  { %v2413_v41 = vpop.permute.xlu1 %2412 }
0x1949   :  { %v2415_v44 = vmul.f32 %v3431_v56, %v2413_v41 }
0x194b   :  { %2417 = vrot.lane.b32.xlu0 %v2415_v44, %s3477_s23 }
0x19bd   :  { %v2418_v51 = vpop.permute.xlu0 %2417 }
0x19be   :  { %v2420_v53 = vadd.f32 %v2418_v51, %v2410_v49 }
0x19c0   :  { %3432 = vtanh.f32 %v2420_v53 }
0x19cd   :  { %v3433_v10 = vpop.eup %3432 }
0x19ce   :  { %2423 = vrot.lane.b32.xlu1 %v3433_v10, %s3476_s22 }
0x1a40   :  { %v2424_v59 = vpop.permute.xlu1 %2423 }
0x1a41   :  { %v2426_v60 = vmul.f32 %v3431_v56, %v2424_v59 }
0x1a43   :  { %2428 = vrot.lane.b32.xlu0 %v2426_v60, %s3477_s23 }
0x1ab5   :  { %v2429_v61 = vpop.permute.xlu0 %2428 }
0x1ab6   :  { %2431 = vst.msk [vmem:[#allocation2 + $0x38] sm:$0xff] %vm254_vm3, %v2429_v61 }
0x1abd   :  { %v2439_v43 = vld [vmem:[#allocation2 + $0x38] sm:$0xff] }
0x1abe   :  { %3292 = vmatmul.mubr.msk.f32.gmra.mxu1 %vm254_vm3, %v2439_v43 }
0x1b7e   :  { %v3293_v63 = vpop.f32.mrf.mxu1 }
0x1b7f   :  { %v2716_v0 = vadd.f32 %v3293_v63, %v3273_v62 }
0x1b80   :  { %v2710_v2 = vpop.f32.mrf.mxu1 }
0x1b81   :  { %v2731_v3 = vadd.f32 %v4119_v26, %v2716_v0  ;;  %v2711_v4 = vadd.f32 %v2710_v2, %v2581_v1 }
0x1b83   :  { %2739 = vst.msk [vmem:[%s4174_s4 + $0x38] sm:$0xff] %vm61_vm0, %v2731_v3  ;;  %v2730_v5 = vadd.f32 %v4119_v26, %v2711_v4 }
0x1b85   :  { %2738 = vst.msk [vmem:[%s4174_s4 + $0x30] sm:$0xff] %vm61_vm0, %v2730_v5 }
0x1b86   :  { %2744 = vsyncpa [#allocation4], 1 }

</bundles_post_ra>
